<compile_context>
chip_gen: v7x
topology: tpu7x:2x2x1
jax: 0.10.0
libtpu: 0.0.40
codegen_flags: <defaults>
</compile_context>

<pallas_src>
import functools

import jax
import jax.numpy as jnp
import numpy as np
from jax.experimental import pallas as pl
from jax.experimental.pallas import tpu as pltpu


_PADL = 128   # lane border around the flattened activation (>= W+1, multiple of 128)


# ----------------------------- fused Pallas kernel -----------------------------

def _dla_tree_kernel(x_ref, mask_ref,
                     w1_ref, b1_ref, w2_ref, b2_ref, wsc_ref, bsc_ref,
                     w1r_ref, b1r_ref, w2r_ref, b2r_ref,
                     rw1_ref, rw2_ref, rb_ref,
                     out_ref,
                     rowpad_s, im2col_s,
                     *, H, W, CP):
    """Whole DLATree(level=1) forward for one sample.

    Activations are (C, H*W) f32 with the lane axis carrying the H*W pixels.
      rowpad_s : (CP, _PADL + H*W + _PADL) zero-bordered staging buffer
      im2col_s : (9*CP, H*W) im2col slab consumed by one MXU matmul per conv
    """
    HW = H * W
    # Zero once per invocation; only the [_PADL, _PADL+HW) window is ever written,
    # so the zero borders provide the conv's same-padding for free.
    rowpad_s[...] = jnp.zeros_like(rowpad_s)
    mask = mask_ref[...]                              # (3, HW): dx = -1, 0, +1 validity

    def conv3x3(a, w_ref_, b_ref_, relu):
        # Stage the activation into the zero-bordered flat buffer (aligned store).
        rowpad_s[:, _PADL:_PADL + HW] = a
        row = rowpad_s[...]                           # (CP, _PADL + HW + _PADL)
        # Build the (9*CP, HW) im2col slab: tap (dy, dx) is a lane-shifted slice;
        # the dx row-wraparound columns are zeroed by the precomputed mask.
        for dy in (-1, 0, 1):
            for dx in (-1, 0, 1):
                t = (dy + 1) * 3 + (dx + 1)
                off = _PADL + dy * W + dx
                slab = row[:, off:off + HW] * mask[dx + 1:dx + 2, :]
                im2col_s[t * CP:(t + 1) * CP, :] = slab
        # Single lane-dense MXU matmul (K = 9*CP) + folded-BN bias (+ optional ReLU).
        y = jnp.dot(w_ref_[...], im2col_s[...],
                    preferred_element_type=jnp.float32) + b_ref_[...]
        return jnp.maximum(y, 0.0) if relu else y

    x = x_ref[...]                                                    # (CP, HW)

    # ---- left BasicBlock (Cin -> Cout), conv1x1+BN projection shortcut ----
    h = conv3x3(x, w1_ref, b1_ref, relu=True)
    y = conv3x3(h, w2_ref, b2_ref, relu=False)
    s = jnp.dot(wsc_ref[...], x, preferred_element_type=jnp.float32) + bsc_ref[...]
    x1 = jnp.maximum(y + s, 0.0)

    # ---- right BasicBlock (Cout -> Cout), identity shortcut ----
    h2 = conv3x3(x1, w1r_ref, b1r_ref, relu=True)
    y2 = conv3x3(h2, w2r_ref, b2r_ref, relu=False)
    x2 = jnp.maximum(y2 + x1, 0.0)

    # ---- DLARoot: concat folded into two 1x1 matmuls, + folded BN + ReLU ----
    out = jnp.dot(rw1_ref[...], x1, preferred_element_type=jnp.float32)
    out = out + jnp.dot(rw2_ref[...], x2, preferred_element_type=jnp.float32)
    out_ref[...] = jnp.maximum(out + rb_ref[...], 0.0)                # lane-dense store


# --------------------- operand prep (BN folding, im2col order) ---------------------

def _prepare_operands(params, Cin, Cout, H, W):
    """Fold BN scale into weights and reshape everything into the kernel's
    channel-first, im2col-ordered matmul form."""
    CP = Cout                     # channel count used inside the kernel (Cin padded up)
    HW = H * W

    def fold3x3(w_hwio, bn):      # w_hwio: (3, 3, cin, Cout), bn: ((1,Cout), (1,Cout))
        scale, bias = bn
        cin = w_hwio.shape[2]
        w = jnp.transpose(w_hwio, (3, 0, 1, 2))                        # (Cout,3,3,cin)
        w = jnp.pad(w, ((0, 0), (0, 0), (0, 0), (0, CP - cin)))
        w = w.reshape(Cout, 9 * CP) * scale.reshape(Cout, 1)           # fold BN scale
        return w.astype(jnp.float32), bias.reshape(Cout, 1).astype(jnp.float32)

    def fold1x1(w_io, bn):        # w_io: (cin, Cout)
        scale, bias = bn
        w = jnp.pad(w_io.T, ((0, 0), (0, CP - w_io.shape[0])))         # (Cout, CP)
        w = w * scale.reshape(Cout, 1)
        return w.astype(jnp.float32), bias.reshape(Cout, 1).astype(jnp.float32)

    pleft, pright = params['left'], params['right']
    w1, b1 = fold3x3(pleft['w1'], pleft['bn1'])
    w2, b2 = fold3x3(pleft['w2'], pleft['bn2'])
    if 'wsc' in pleft:                                   # projection shortcut (Cin != Cout)
        wsc, bsc = fold1x1(pleft['wsc'], pleft['bnsc'])
    else:                                                # identity shortcut as matmul
        wsc = jnp.pad(jnp.eye(Cout, dtype=jnp.float32), ((0, 0), (0, CP - Cout)))
        bsc = jnp.zeros((Cout, 1), jnp.float32)
    w1r, b1r = fold3x3(pright['w1'], pright['bn1'])
    w2r, b2r = fold3x3(pright['w2'], pright['bn2'])

    rscale, rbias = params['root_bn']
    rw1 = (params['root_w'][:Cout].T * rscale.reshape(Cout, 1)).astype(jnp.float32)
    rw2 = (params['root_w'][Cout:].T * rscale.reshape(Cout, 1)).astype(jnp.float32)
    rb = rbias.reshape(Cout, 1).astype(jnp.float32)

    # Per-dx column-validity mask (zeroes the lane-shift row wraparound columns).
    col = np.arange(HW) % W
    mask = np.stack([((col + dx >= 0) & (col + dx < W)).astype(np.float32)
                     for dx in (-1, 0, 1)], axis=0)                    # (3, HW)

    return (jnp.asarray(mask), w1, b1, w2, b2, wsc, bsc,
            w1r, b1r, w2r, b2r, rw1, rw2, rb)


# ---------------------------------- forward pass ----------------------------------

def dla_tree_forward(x_nchw, params):
    """DLATree(level=1, stride=1) forward. Input/output NCHW like PyTorch."""
    N, Cin, H, W = x_nchw.shape
    Cout = params['root_w'].shape[1]
    CP = Cout
    HW = H * W
    # Kernel layout assumptions for this small single-block-per-sample design.
    # TODO(synk): add (8,128)-aligned spatial tiling / pipelining for large H*W
    #             instead of holding one full sample in VMEM.
    assert Cout % 8 == 0 and Cin <= CP and HW % 128 == 0 and W + 1 <= _PADL

    ops = _prepare_operands(params, Cin, Cout, H, W)

    # Lane-dense input layout: channel-padded to CP, flattened to (N, CP, H*W).
    x = jnp.pad(x_nchw.astype(jnp.float32),
                ((0, 0), (0, CP - Cin), (0, 0), (0, 0))).reshape(N, CP, HW)

    const2d = lambda n: (0, 0)
    in_specs = [pl.BlockSpec((None, CP, HW), lambda n: (n, 0, 0))]   # per-sample block
    in_specs += [pl.BlockSpec(o.shape, const2d) for o in ops]        # weights resident

    out = pl.pallas_call(
        functools.partial(_dla_tree_kernel, H=H, W=W, CP=CP),
        grid=(N,),                                    # one sample per grid step / core
        in_specs=in_specs,
        out_specs=pl.BlockSpec((None, Cout, HW), lambda n: (n, 0, 0)),
        out_shape=jax.ShapeDtypeStruct((N, Cout, HW), jnp.float32),
        scratch_shapes=[
            pltpu.VMEM((CP, _PADL + HW + _PADL), jnp.float32),   # zero-bordered staging
            pltpu.VMEM((9 * CP, HW), jnp.float32),               # im2col slab
        ],
        compiler_params=pltpu.CompilerParams(dimension_semantics=("parallel",)),
    )(x, *ops)

    return out.reshape(N, Cout, H, W)                # (C, H*W) -> NCHW, metadata only


# ------------------------- parameters (deterministic) -------------------------

def _bn_params(key, C, eps=1e-5):
    k1, k2, k3, k4 = jax.random.split(key, 4)
    gamma = jax.random.uniform(k1, (C,), minval=0.5, maxval=1.5)
    beta = 0.1 * jax.random.normal(k2, (C,))
    mean = 0.1 * jax.random.normal(k3, (C,))
    var = jax.random.uniform(k4, (C,), minval=0.5, maxval=1.5)
    scale = gamma / jnp.sqrt(var + eps)
    bias = beta - mean * scale
    return (scale.reshape(1, C).astype(jnp.float32),
            bias.reshape(1, C).astype(jnp.float32))


def init_basic_block(key, cin, cout):
    ks = jax.random.split(key, 5)
    p = {
        'w1': 0.1 * jax.random.normal(ks[0], (3, 3, cin, cout), jnp.float32),
        'bn1': _bn_params(ks[1], cout),
        'w2': 0.1 * jax.random.normal(ks[2], (3, 3, cout, cout), jnp.float32),
        'bn2': _bn_params(ks[3], cout),
    }
    if cin != cout:  # stride fixed at 1 in this script
        ksc = jax.random.split(ks[4], 2)
        p['wsc'] = 0.1 * jax.random.normal(ksc[0], (cin, cout), jnp.float32)
        p['bnsc'] = _bn_params(ksc[1], cout)
    return p


def init_dla_tree(key, cin, cout, level=1):
    # TODO(synk): generalize parameter init / forward recursion for level > 1 subtrees.
    assert level == 1
    ks = jax.random.split(key, 4)
    return {
        'left': init_basic_block(ks[0], cin, cout),
        'right': init_basic_block(ks[1], cout, cout),
        'root_w': 0.1 * jax.random.normal(ks[2], (2 * cout, cout), jnp.float32),
        'root_bn': _bn_params(ks[3], cout),
    }


# ------------------------- pure-JAX reference (check) -------------------------

def _ref_conv3x3(x, w):
    return jax.lax.conv_general_dilated(
        x, w, (1, 1), 'SAME', dimension_numbers=('NHWC', 'HWIO', 'NHWC'))


def _ref_block(x, p):
    h = jnp.maximum(_ref_conv3x3(x, p['w1']) * p['bn1'][0] + p['bn1'][1], 0.0)
    y = _ref_conv3x3(h, p['w2']) * p['bn2'][0] + p['bn2'][1]
    if 'wsc' in p:
        s = jnp.einsum('nhwc,cd->nhwd', x, p['wsc']) * p['bnsc'][0] + p['bnsc'][1]
    else:
        s = x
    return jnp.maximum(y + s, 0.0)


def _ref_tree(x_nchw, params):
    x = jnp.transpose(x_nchw, (0, 2, 3, 1))
    x1 = _ref_block(x, params['left'])
    x2 = _ref_block(x1, params['right'])
    cat = jnp.concatenate([x1, x2], axis=-1)
    out = jnp.einsum('nhwc,cd->nhwd', cat, params['root_w'])
    out = jnp.maximum(out * params['root_bn'][0] + params['root_bn'][1], 0.0)
    return jnp.transpose(out, (0, 3, 1, 2))


# ----------------------------------- main -----------------------------------

if __name__ == "__main__":
    key = jax.random.PRNGKey(0)
    kx, kp = jax.random.split(key)

    N, Cin, H, W = 2, 4, 16, 16
    Cout = 8

    x = jax.random.normal(kx, (N, Cin, H, W), jnp.float32)   # NCHW, like PyTorch
    params = init_dla_tree(kp, Cin, Cout, level=1)

    out = dla_tree_forward(x, params)
    out = jax.block_until_ready(out)
    assert out.shape == (N, Cout, H, W)

    ref = _ref_tree(x, params)
    np.testing.assert_allclose(np.asarray(out), np.asarray(ref), rtol=2e-3, atol=2e-3)

    print("KERNEL_OK")
</pallas_src>

<mosaic_0001>
module attributes {stable_mosaic.version = 11 : i64} {
  func.func @_dla_tree_kernel(%arg0: i32, %arg1: memref<1x8x256xf32, #tpu.memory_space<vmem>>, %arg2: memref<3x256xf32, #tpu.memory_space<vmem>>, %arg3: memref<8x72xf32, #tpu.memory_space<vmem>>, %arg4: memref<8x1xf32, #tpu.memory_space<vmem>>, %arg5: memref<8x72xf32, #tpu.memory_space<vmem>>, %arg6: memref<8x1xf32, #tpu.memory_space<vmem>>, %arg7: memref<8x8xf32, #tpu.memory_space<vmem>>, %arg8: memref<8x1xf32, #tpu.memory_space<vmem>>, %arg9: memref<8x72xf32, #tpu.memory_space<vmem>>, %arg10: memref<8x1xf32, #tpu.memory_space<vmem>>, %arg11: memref<8x72xf32, #tpu.memory_space<vmem>>, %arg12: memref<8x1xf32, #tpu.memory_space<vmem>>, %arg13: memref<8x8xf32, #tpu.memory_space<vmem>>, %arg14: memref<8x8xf32, #tpu.memory_space<vmem>>, %arg15: memref<8x1xf32, #tpu.memory_space<vmem>>, %arg16: memref<1x8x256xf32, #tpu.memory_space<vmem>>, %arg17: memref<8x512xf32, #tpu.memory_space<vmem>>, %arg18: memref<72x256xf32, #tpu.memory_space<vmem>>) attributes {dimension_semantics = [#tpu.dimension_semantics<parallel>], iteration_bounds = array<i64: 2>, scalar_prefetch = 0 : i64, scratch_operands = 2 : i64, tpu.core_type = #tpu.core_type<tc>, window_params = [{transform_indices = @transform_0, window_bounds = array<i64: 1, 8, 256>}, {pipeline_mode = #tpu.pipeline_mode<synchronous>, transform_indices = @transform_1, window_bounds = array<i64: 3, 256>}, {pipeline_mode = #tpu.pipeline_mode<synchronous>, transform_indices = @transform_2, window_bounds = array<i64: 8, 72>}, {pipeline_mode = #tpu.pipeline_mode<synchronous>, transform_indices = @transform_3, window_bounds = array<i64: 8, 1>}, {pipeline_mode = #tpu.pipeline_mode<synchronous>, transform_indices = @transform_4, window_bounds = array<i64: 8, 72>}, {pipeline_mode = #tpu.pipeline_mode<synchronous>, transform_indices = @transform_5, window_bounds = array<i64: 8, 1>}, {pipeline_mode = #tpu.pipeline_mode<synchronous>, transform_indices = @transform_6, window_bounds = array<i64: 8, 8>}, {pipeline_mode = #tpu.pipeline_mode<synchronous>, transform_indices = @transform_7, window_bounds = array<i64: 8, 1>}, {pipeline_mode = #tpu.pipeline_mode<synchronous>, transform_indices = @transform_8, window_bounds = array<i64: 8, 72>}, {pipeline_mode = #tpu.pipeline_mode<synchronous>, transform_indices = @transform_9, window_bounds = array<i64: 8, 1>}, {pipeline_mode = #tpu.pipeline_mode<synchronous>, transform_indices = @transform_10, window_bounds = array<i64: 8, 72>}, {pipeline_mode = #tpu.pipeline_mode<synchronous>, transform_indices = @transform_11, window_bounds = array<i64: 8, 1>}, {pipeline_mode = #tpu.pipeline_mode<synchronous>, transform_indices = @transform_12, window_bounds = array<i64: 8, 8>}, {pipeline_mode = #tpu.pipeline_mode<synchronous>, transform_indices = @transform_13, window_bounds = array<i64: 8, 8>}, {pipeline_mode = #tpu.pipeline_mode<synchronous>, transform_indices = @transform_14, window_bounds = array<i64: 8, 1>}, {transform_indices = @transform_15, window_bounds = array<i64: 1, 8, 256>}]} {
    %cst = arith.constant 0.000000e+00 : f32
    %0 = vector.broadcast %cst : f32 to vector<8x512xf32>
    %c0 = arith.constant 0 : index
    %c0_0 = arith.constant 0 : index
    %1 = vector.load %arg17[%c0, %c0_0] : memref<8x512xf32, #tpu.memory_space<vmem>>, vector<8x512xf32>
    tpu.vector_store %arg17[%c0, %c0_0], %0 {strides = array<i32>} : memref<8x512xf32, #tpu.memory_space<vmem>>, vector<8x512xf32>,
    %c0_1 = arith.constant 0 : index
    %c0_2 = arith.constant 0 : index
    %2 = vector.load %arg2[%c0_1, %c0_2] : memref<3x256xf32, #tpu.memory_space<vmem>>, vector<3x256xf32>
    %c0_3 = arith.constant 0 : index
    %c0_4 = arith.constant 0 : index
    %c0_5 = arith.constant 0 : index
    %3 = vector.load %arg1[%c0_3, %c0_4, %c0_5] : memref<1x8x256xf32, #tpu.memory_space<vmem>>, vector<1x8x256xf32>
    %4 = vector.shape_cast %3 : vector<1x8x256xf32> to vector<8x256xf32>
    %c0_6 = arith.constant 0 : index
    %c128 = arith.constant 128 : index
    %5 = vector.load %arg17[%c0_6, %c128] : memref<8x512xf32, #tpu.memory_space<vmem>>, vector<8x256xf32>
    tpu.vector_store %arg17[%c0_6, %c128], %4 {strides = array<i32>} : memref<8x512xf32, #tpu.memory_space<vmem>>, vector<8x256xf32>,
    %c0_7 = arith.constant 0 : index
    %c0_8 = arith.constant 0 : index
    %6 = vector.load %arg17[%c0_7, %c0_8] : memref<8x512xf32, #tpu.memory_space<vmem>>, vector<8x512xf32>
    %7 = vector.extract_strided_slice %6 {offsets = [0, 111], sizes = [8, 256], strides = [1, 1]} : vector<8x512xf32> to vector<8x256xf32>
    %8 = vector.extract_strided_slice %2 {offsets = [0, 0], sizes = [1, 256], strides = [1, 1]} : vector<3x256xf32> to vector<1x256xf32>
    %9 = vector.broadcast %8 : vector<1x256xf32> to vector<8x256xf32>
    %10 = arith.mulf %7, %9 : vector<8x256xf32>
    %c0_9 = arith.constant 0 : index
    %c0_10 = arith.constant 0 : index
    %11 = vector.load %arg18[%c0_9, %c0_10] : memref<72x256xf32, #tpu.memory_space<vmem>>, vector<8x256xf32>
    tpu.vector_store %arg18[%c0_9, %c0_10], %10 {strides = array<i32>} : memref<72x256xf32, #tpu.memory_space<vmem>>, vector<8x256xf32>,
    %12 = vector.extract_strided_slice %6 {offsets = [0, 112], sizes = [8, 256], strides = [1, 1]} : vector<8x512xf32> to vector<8x256xf32>
    %13 = vector.extract_strided_slice %2 {offsets = [1, 0], sizes = [1, 256], strides = [1, 1]} : vector<3x256xf32> to vector<1x256xf32>
    %14 = vector.broadcast %13 : vector<1x256xf32> to vector<8x256xf32>
    %15 = arith.mulf %12, %14 : vector<8x256xf32>
    %c8 = arith.constant 8 : index
    %c0_11 = arith.constant 0 : index
    %16 = vector.load %arg18[%c8, %c0_11] : memref<72x256xf32, #tpu.memory_space<vmem>>, vector<8x256xf32>
    tpu.vector_store %arg18[%c8, %c0_11], %15 {strides = array<i32>} : memref<72x256xf32, #tpu.memory_space<vmem>>, vector<8x256xf32>,
    %17 = vector.extract_strided_slice %6 {offsets = [0, 113], sizes = [8, 256], strides = [1, 1]} : vector<8x512xf32> to vector<8x256xf32>
    %18 = vector.extract_strided_slice %2 {offsets = [2, 0], sizes = [1, 256], strides = [1, 1]} : vector<3x256xf32> to vector<1x256xf32>
    %19 = vector.broadcast %18 : vector<1x256xf32> to vector<8x256xf32>
    %20 = arith.mulf %17, %19 : vector<8x256xf32>
    %c16 = arith.constant 16 : index
    %c0_12 = arith.constant 0 : index
    %21 = vector.load %arg18[%c16, %c0_12] : memref<72x256xf32, #tpu.memory_space<vmem>>, vector<8x256xf32>
    tpu.vector_store %arg18[%c16, %c0_12], %20 {strides = array<i32>} : memref<72x256xf32, #tpu.memory_space<vmem>>, vector<8x256xf32>,
    %22 = vector.extract_strided_slice %6 {offsets = [0, 127], sizes = [8, 256], strides = [1, 1]} : vector<8x512xf32> to vector<8x256xf32>
    %23 = vector.extract_strided_slice %2 {offsets = [0, 0], sizes = [1, 256], strides = [1, 1]} : vector<3x256xf32> to vector<1x256xf32>
    %24 = vector.broadcast %23 : vector<1x256xf32> to vector<8x256xf32>
    %25 = arith.mulf %22, %24 : vector<8x256xf32>
    %c24 = arith.constant 24 : index
    %c0_13 = arith.constant 0 : index
    %26 = vector.load %arg18[%c24, %c0_13] : memref<72x256xf32, #tpu.memory_space<vmem>>, vector<8x256xf32>
    tpu.vector_store %arg18[%c24, %c0_13], %25 {strides = array<i32>} : memref<72x256xf32, #tpu.memory_space<vmem>>, vector<8x256xf32>,
    %27 = vector.extract_strided_slice %6 {offsets = [0, 128], sizes = [8, 256], strides = [1, 1]} : vector<8x512xf32> to vector<8x256xf32>
    %28 = vector.extract_strided_slice %2 {offsets = [1, 0], sizes = [1, 256], strides = [1, 1]} : vector<3x256xf32> to vector<1x256xf32>
    %29 = vector.broadcast %28 : vector<1x256xf32> to vector<8x256xf32>
    %30 = arith.mulf %27, %29 : vector<8x256xf32>
    %c32 = arith.constant 32 : index
    %c0_14 = arith.constant 0 : index
    %31 = vector.load %arg18[%c32, %c0_14] : memref<72x256xf32, #tpu.memory_space<vmem>>, vector<8x256xf32>
    tpu.vector_store %arg18[%c32, %c0_14], %30 {strides = array<i32>} : memref<72x256xf32, #tpu.memory_space<vmem>>, vector<8x256xf32>,
    %32 = vector.extract_strided_slice %6 {offsets = [0, 129], sizes = [8, 256], strides = [1, 1]} : vector<8x512xf32> to vector<8x256xf32>
    %33 = vector.extract_strided_slice %2 {offsets = [2, 0], sizes = [1, 256], strides = [1, 1]} : vector<3x256xf32> to vector<1x256xf32>
    %34 = vector.broadcast %33 : vector<1x256xf32> to vector<8x256xf32>
    %35 = arith.mulf %32, %34 : vector<8x256xf32>
    %c40 = arith.constant 40 : index
    %c0_15 = arith.constant 0 : index
    %36 = vector.load %arg18[%c40, %c0_15] : memref<72x256xf32, #tpu.memory_space<vmem>>, vector<8x256xf32>
    tpu.vector_store %arg18[%c40, %c0_15], %35 {strides = array<i32>} : memref<72x256xf32, #tpu.memory_space<vmem>>, vector<8x256xf32>,
    %37 = vector.extract_strided_slice %6 {offsets = [0, 143], sizes = [8, 256], strides = [1, 1]} : vector<8x512xf32> to vector<8x256xf32>
    %38 = vector.extract_strided_slice %2 {offsets = [0, 0], sizes = [1, 256], strides = [1, 1]} : vector<3x256xf32> to vector<1x256xf32>
    %39 = vector.broadcast %38 : vector<1x256xf32> to vector<8x256xf32>
    %40 = arith.mulf %37, %39 : vector<8x256xf32>
    %c48 = arith.constant 48 : index
    %c0_16 = arith.constant 0 : index
    %41 = vector.load %arg18[%c48, %c0_16] : memref<72x256xf32, #tpu.memory_space<vmem>>, vector<8x256xf32>
    tpu.vector_store %arg18[%c48, %c0_16], %40 {strides = array<i32>} : memref<72x256xf32, #tpu.memory_space<vmem>>, vector<8x256xf32>,
    %42 = vector.extract_strided_slice %6 {offsets = [0, 144], sizes = [8, 256], strides = [1, 1]} : vector<8x512xf32> to vector<8x256xf32>
    %43 = vector.extract_strided_slice %2 {offsets = [1, 0], sizes = [1, 256], strides = [1, 1]} : vector<3x256xf32> to vector<1x256xf32>
    %44 = vector.broadcast %43 : vector<1x256xf32> to vector<8x256xf32>
    %45 = arith.mulf %42, %44 : vector<8x256xf32>
    %c56 = arith.constant 56 : index
    %c0_17 = arith.constant 0 : index
    %46 = vector.load %arg18[%c56, %c0_17] : memref<72x256xf32, #tpu.memory_space<vmem>>, vector<8x256xf32>
    tpu.vector_store %arg18[%c56, %c0_17], %45 {strides = array<i32>} : memref<72x256xf32, #tpu.memory_space<vmem>>, vector<8x256xf32>,
    %47 = vector.extract_strided_slice %6 {offsets = [0, 145], sizes = [8, 256], strides = [1, 1]} : vector<8x512xf32> to vector<8x256xf32>
    %48 = vector.extract_strided_slice %2 {offsets = [2, 0], sizes = [1, 256], strides = [1, 1]} : vector<3x256xf32> to vector<1x256xf32>
    %49 = vector.broadcast %48 : vector<1x256xf32> to vector<8x256xf32>
    %50 = arith.mulf %47, %49 : vector<8x256xf32>
    %c64 = arith.constant 64 : index
    %c0_18 = arith.constant 0 : index
    %51 = vector.load %arg18[%c64, %c0_18] : memref<72x256xf32, #tpu.memory_space<vmem>>, vector<8x256xf32>
    tpu.vector_store %arg18[%c64, %c0_18], %50 {strides = array<i32>} : memref<72x256xf32, #tpu.memory_space<vmem>>, vector<8x256xf32>,
    %c0_19 = arith.constant 0 : index
    %c0_20 = arith.constant 0 : index
    %52 = vector.load %arg3[%c0_19, %c0_20] : memref<8x72xf32, #tpu.memory_space<vmem>>, vector<8x72xf32>
    %c0_21 = arith.constant 0 : index
    %c0_22 = arith.constant 0 : index
    %53 = vector.load %arg18[%c0_21, %c0_22] : memref<72x256xf32, #tpu.memory_space<vmem>>, vector<72x256xf32>
    %cst_23 = arith.constant dense<0.000000e+00> : vector<8x256xf32>
    %54 = tpu.matmul %52, %53, %cst_23 {dimension_numbers = #tpu.dot_dimension_numbers<[1], [0], [0], [1], [0, 0, 1, 1], [], []>} : vector<8x72xf32>, vector<72x256xf32>, vector<8x256xf32> -> vector<8x256xf32>
    %c0_24 = arith.constant 0 : index
    %c0_25 = arith.constant 0 : index
    %55 = vector.load %arg4[%c0_24, %c0_25] : memref<8x1xf32, #tpu.memory_space<vmem>>, vector<8x1xf32>
    %56 = vector.broadcast %55 : vector<8x1xf32> to vector<8x256xf32>
    %57 = arith.addf %54, %56 : vector<8x256xf32>
    %cst_26 = arith.constant 0.000000e+00 : f32
    %58 = vector.broadcast %cst_26 : f32 to vector<8x256xf32>
    %59 = arith.maximumf %57, %58 : vector<8x256xf32>
    %c0_27 = arith.constant 0 : index
    %c128_28 = arith.constant 128 : index
    %60 = vector.load %arg17[%c0_27, %c128_28] : memref<8x512xf32, #tpu.memory_space<vmem>>, vector<8x256xf32>
    tpu.vector_store %arg17[%c0_27, %c128_28], %59 {strides = array<i32>} : memref<8x512xf32, #tpu.memory_space<vmem>>, vector<8x256xf32>,
    %c0_29 = arith.constant 0 : index
    %c0_30 = arith.constant 0 : index
    %61 = vector.load %arg17[%c0_29, %c0_30] : memref<8x512xf32, #tpu.memory_space<vmem>>, vector<8x512xf32>
    %62 = vector.extract_strided_slice %61 {offsets = [0, 111], sizes = [8, 256], strides = [1, 1]} : vector<8x512xf32> to vector<8x256xf32>
    %63 = vector.extract_strided_slice %2 {offsets = [0, 0], sizes = [1, 256], strides = [1, 1]} : vector<3x256xf32> to vector<1x256xf32>
    %64 = vector.broadcast %63 : vector<1x256xf32> to vector<8x256xf32>
    %65 = arith.mulf %62, %64 : vector<8x256xf32>
    %c0_31 = arith.constant 0 : index
    %c0_32 = arith.constant 0 : index
    %66 = vector.load %arg18[%c0_31, %c0_32] : memref<72x256xf32, #tpu.memory_space<vmem>>, vector<8x256xf32>
    tpu.vector_store %arg18[%c0_31, %c0_32], %65 {strides = array<i32>} : memref<72x256xf32, #tpu.memory_space<vmem>>, vector<8x256xf32>,
    %67 = vector.extract_strided_slice %61 {offsets = [0, 112], sizes = [8, 256], strides = [1, 1]} : vector<8x512xf32> to vector<8x256xf32>
    %68 = vector.extract_strided_slice %2 {offsets = [1, 0], sizes = [1, 256], strides = [1, 1]} : vector<3x256xf32> to vector<1x256xf32>
    %69 = vector.broadcast %68 : vector<1x256xf32> to vector<8x256xf32>
    %70 = arith.mulf %67, %69 : vector<8x256xf32>
    %c8_33 = arith.constant 8 : index
    %c0_34 = arith.constant 0 : index
    %71 = vector.load %arg18[%c8_33, %c0_34] : memref<72x256xf32, #tpu.memory_space<vmem>>, vector<8x256xf32>
    tpu.vector_store %arg18[%c8_33, %c0_34], %70 {strides = array<i32>} : memref<72x256xf32, #tpu.memory_space<vmem>>, vector<8x256xf32>,
    %72 = vector.extract_strided_slice %61 {offsets = [0, 113], sizes = [8, 256], strides = [1, 1]} : vector<8x512xf32> to vector<8x256xf32>
    %73 = vector.extract_strided_slice %2 {offsets = [2, 0], sizes = [1, 256], strides = [1, 1]} : vector<3x256xf32> to vector<1x256xf32>
    %74 = vector.broadcast %73 : vector<1x256xf32> to vector<8x256xf32>
    %75 = arith.mulf %72, %74 : vector<8x256xf32>
    %c16_35 = arith.constant 16 : index
    %c0_36 = arith.constant 0 : index
    %76 = vector.load %arg18[%c16_35, %c0_36] : memref<72x256xf32, #tpu.memory_space<vmem>>, vector<8x256xf32>
    tpu.vector_store %arg18[%c16_35, %c0_36], %75 {strides = array<i32>} : memref<72x256xf32, #tpu.memory_space<vmem>>, vector<8x256xf32>,
    %77 = vector.extract_strided_slice %61 {offsets = [0, 127], sizes = [8, 256], strides = [1, 1]} : vector<8x512xf32> to vector<8x256xf32>
    %78 = vector.extract_strided_slice %2 {offsets = [0, 0], sizes = [1, 256], strides = [1, 1]} : vector<3x256xf32> to vector<1x256xf32>
    %79 = vector.broadcast %78 : vector<1x256xf32> to vector<8x256xf32>
    %80 = arith.mulf %77, %79 : vector<8x256xf32>
    %c24_37 = arith.constant 24 : index
    %c0_38 = arith.constant 0 : index
    %81 = vector.load %arg18[%c24_37, %c0_38] : memref<72x256xf32, #tpu.memory_space<vmem>>, vector<8x256xf32>
    tpu.vector_store %arg18[%c24_37, %c0_38], %80 {strides = array<i32>} : memref<72x256xf32, #tpu.memory_space<vmem>>, vector<8x256xf32>,
    %82 = vector.extract_strided_slice %61 {offsets = [0, 128], sizes = [8, 256], strides = [1, 1]} : vector<8x512xf32> to vector<8x256xf32>
    %83 = vector.extract_strided_slice %2 {offsets = [1, 0], sizes = [1, 256], strides = [1, 1]} : vector<3x256xf32> to vector<1x256xf32>
    %84 = vector.broadcast %83 : vector<1x256xf32> to vector<8x256xf32>
    %85 = arith.mulf %82, %84 : vector<8x256xf32>
    %c32_39 = arith.constant 32 : index
    %c0_40 = arith.constant 0 : index
    %86 = vector.load %arg18[%c32_39, %c0_40] : memref<72x256xf32, #tpu.memory_space<vmem>>, vector<8x256xf32>
    tpu.vector_store %arg18[%c32_39, %c0_40], %85 {strides = array<i32>} : memref<72x256xf32, #tpu.memory_space<vmem>>, vector<8x256xf32>,
    %87 = vector.extract_strided_slice %61 {offsets = [0, 129], sizes = [8, 256], strides = [1, 1]} : vector<8x512xf32> to vector<8x256xf32>
    %88 = vector.extract_strided_slice %2 {offsets = [2, 0], sizes = [1, 256], strides = [1, 1]} : vector<3x256xf32> to vector<1x256xf32>
    %89 = vector.broadcast %88 : vector<1x256xf32> to vector<8x256xf32>
    %90 = arith.mulf %87, %89 : vector<8x256xf32>
    %c40_41 = arith.constant 40 : index
    %c0_42 = arith.constant 0 : index
    %91 = vector.load %arg18[%c40_41, %c0_42] : memref<72x256xf32, #tpu.memory_space<vmem>>, vector<8x256xf32>
    tpu.vector_store %arg18[%c40_41, %c0_42], %90 {strides = array<i32>} : memref<72x256xf32, #tpu.memory_space<vmem>>, vector<8x256xf32>,
    %92 = vector.extract_strided_slice %61 {offsets = [0, 143], sizes = [8, 256], strides = [1, 1]} : vector<8x512xf32> to vector<8x256xf32>
    %93 = vector.extract_strided_slice %2 {offsets = [0, 0], sizes = [1, 256], strides = [1, 1]} : vector<3x256xf32> to vector<1x256xf32>
    %94 = vector.broadcast %93 : vector<1x256xf32> to vector<8x256xf32>
    %95 = arith.mulf %92, %94 : vector<8x256xf32>
    %c48_43 = arith.constant 48 : index
    %c0_44 = arith.constant 0 : index
    %96 = vector.load %arg18[%c48_43, %c0_44] : memref<72x256xf32, #tpu.memory_space<vmem>>, vector<8x256xf32>
    tpu.vector_store %arg18[%c48_43, %c0_44], %95 {strides = array<i32>} : memref<72x256xf32, #tpu.memory_space<vmem>>, vector<8x256xf32>,
    %97 = vector.extract_strided_slice %61 {offsets = [0, 144], sizes = [8, 256], strides = [1, 1]} : vector<8x512xf32> to vector<8x256xf32>
    %98 = vector.extract_strided_slice %2 {offsets = [1, 0], sizes = [1, 256], strides = [1, 1]} : vector<3x256xf32> to vector<1x256xf32>
    %99 = vector.broadcast %98 : vector<1x256xf32> to vector<8x256xf32>
    %100 = arith.mulf %97, %99 : vector<8x256xf32>
    %c56_45 = arith.constant 56 : index
    %c0_46 = arith.constant 0 : index
    %101 = vector.load %arg18[%c56_45, %c0_46] : memref<72x256xf32, #tpu.memory_space<vmem>>, vector<8x256xf32>
    tpu.vector_store %arg18[%c56_45, %c0_46], %100 {strides = array<i32>} : memref<72x256xf32, #tpu.memory_space<vmem>>, vector<8x256xf32>,
    %102 = vector.extract_strided_slice %61 {offsets = [0, 145], sizes = [8, 256], strides = [1, 1]} : vector<8x512xf32> to vector<8x256xf32>
    %103 = vector.extract_strided_slice %2 {offsets = [2, 0], sizes = [1, 256], strides = [1, 1]} : vector<3x256xf32> to vector<1x256xf32>
    %104 = vector.broadcast %103 : vector<1x256xf32> to vector<8x256xf32>
    %105 = arith.mulf %102, %104 : vector<8x256xf32>
    %c64_47 = arith.constant 64 : index
    %c0_48 = arith.constant 0 : index
    %106 = vector.load %arg18[%c64_47, %c0_48] : memref<72x256xf32, #tpu.memory_space<vmem>>, vector<8x256xf32>
    tpu.vector_store %arg18[%c64_47, %c0_48], %105 {strides = array<i32>} : memref<72x256xf32, #tpu.memory_space<vmem>>, vector<8x256xf32>,
    %c0_49 = arith.constant 0 : index
    %c0_50 = arith.constant 0 : index
    %107 = vector.load %arg5[%c0_49, %c0_50] : memref<8x72xf32, #tpu.memory_space<vmem>>, vector<8x72xf32>
    %c0_51 = arith.constant 0 : index
    %c0_52 = arith.constant 0 : index
    %108 = vector.load %arg18[%c0_51, %c0_52] : memref<72x256xf32, #tpu.memory_space<vmem>>, vector<72x256xf32>
    %cst_53 = arith.constant dense<0.000000e+00> : vector<8x256xf32>
    %109 = tpu.matmul %107, %108, %cst_53 {dimension_numbers = #tpu.dot_dimension_numbers<[1], [0], [0], [1], [0, 0, 1, 1], [], []>} : vector<8x72xf32>, vector<72x256xf32>, vector<8x256xf32> -> vector<8x256xf32>
    %c0_54 = arith.constant 0 : index
    %c0_55 = arith.constant 0 : index
    %110 = vector.load %arg6[%c0_54, %c0_55] : memref<8x1xf32, #tpu.memory_space<vmem>>, vector<8x1xf32>
    %111 = vector.broadcast %110 : vector<8x1xf32> to vector<8x256xf32>
    %112 = arith.addf %109, %111 : vector<8x256xf32>
    %c0_56 = arith.constant 0 : index
    %c0_57 = arith.constant 0 : index
    %113 = vector.load %arg7[%c0_56, %c0_57] : memref<8x8xf32, #tpu.memory_space<vmem>>, vector<8x8xf32>
    %cst_58 = arith.constant dense<0.000000e+00> : vector<8x256xf32>
    %114 = tpu.matmul %113, %4, %cst_58 {dimension_numbers = #tpu.dot_dimension_numbers<[1], [0], [0], [1], [0, 0, 1, 1], [], []>} : vector<8x8xf32>, vector<8x256xf32>, vector<8x256xf32> -> vector<8x256xf32>
    %c0_59 = arith.constant 0 : index
    %c0_60 = arith.constant 0 : index
    %115 = vector.load %arg8[%c0_59, %c0_60] : memref<8x1xf32, #tpu.memory_space<vmem>>, vector<8x1xf32>
    %116 = vector.broadcast %115 : vector<8x1xf32> to vector<8x256xf32>
    %117 = arith.addf %114, %116 : vector<8x256xf32>
    %118 = arith.addf %112, %117 : vector<8x256xf32>
    %cst_61 = arith.constant 0.000000e+00 : f32
    %119 = vector.broadcast %cst_61 : f32 to vector<8x256xf32>
    %120 = arith.maximumf %118, %119 : vector<8x256xf32>
    %c0_62 = arith.constant 0 : index
    %c128_63 = arith.constant 128 : index
    %121 = vector.load %arg17[%c0_62, %c128_63] : memref<8x512xf32, #tpu.memory_space<vmem>>, vector<8x256xf32>
    tpu.vector_store %arg17[%c0_62, %c128_63], %120 {strides = array<i32>} : memref<8x512xf32, #tpu.memory_space<vmem>>, vector<8x256xf32>,
    %c0_64 = arith.constant 0 : index
    %c0_65 = arith.constant 0 : index
    %122 = vector.load %arg17[%c0_64, %c0_65] : memref<8x512xf32, #tpu.memory_space<vmem>>, vector<8x512xf32>
    %123 = vector.extract_strided_slice %122 {offsets = [0, 111], sizes = [8, 256], strides = [1, 1]} : vector<8x512xf32> to vector<8x256xf32>
    %124 = vector.extract_strided_slice %2 {offsets = [0, 0], sizes = [1, 256], strides = [1, 1]} : vector<3x256xf32> to vector<1x256xf32>
    %125 = vector.broadcast %124 : vector<1x256xf32> to vector<8x256xf32>
    %126 = arith.mulf %123, %125 : vector<8x256xf32>
    %c0_66 = arith.constant 0 : index
    %c0_67 = arith.constant 0 : index
    %127 = vector.load %arg18[%c0_66, %c0_67] : memref<72x256xf32, #tpu.memory_space<vmem>>, vector<8x256xf32>
    tpu.vector_store %arg18[%c0_66, %c0_67], %126 {strides = array<i32>} : memref<72x256xf32, #tpu.memory_space<vmem>>, vector<8x256xf32>,
    %128 = vector.extract_strided_slice %122 {offsets = [0, 112], sizes = [8, 256], strides = [1, 1]} : vector<8x512xf32> to vector<8x256xf32>
    %129 = vector.extract_strided_slice %2 {offsets = [1, 0], sizes = [1, 256], strides = [1, 1]} : vector<3x256xf32> to vector<1x256xf32>
    %130 = vector.broadcast %129 : vector<1x256xf32> to vector<8x256xf32>
    %131 = arith.mulf %128, %130 : vector<8x256xf32>
    %c8_68 = arith.constant 8 : index
    %c0_69 = arith.constant 0 : index
    %132 = vector.load %arg18[%c8_68, %c0_69] : memref<72x256xf32, #tpu.memory_space<vmem>>, vector<8x256xf32>
    tpu.vector_store %arg18[%c8_68, %c0_69], %131 {strides = array<i32>} : memref<72x256xf32, #tpu.memory_space<vmem>>, vector<8x256xf32>,
    %133 = vector.extract_strided_slice %122 {offsets = [0, 113], sizes = [8, 256], strides = [1, 1]} : vector<8x512xf32> to vector<8x256xf32>
    %134 = vector.extract_strided_slice %2 {offsets = [2, 0], sizes = [1, 256], strides = [1, 1]} : vector<3x256xf32> to vector<1x256xf32>
    %135 = vector.broadcast %134 : vector<1x256xf32> to vector<8x256xf32>
    %136 = arith.mulf %133, %135 : vector<8x256xf32>
    %c16_70 = arith.constant 16 : index
    %c0_71 = arith.constant 0 : index
    %137 = vector.load %arg18[%c16_70, %c0_71] : memref<72x256xf32, #tpu.memory_space<vmem>>, vector<8x256xf32>
    tpu.vector_store %arg18[%c16_70, %c0_71], %136 {strides = array<i32>} : memref<72x256xf32, #tpu.memory_space<vmem>>, vector<8x256xf32>,
    %138 = vector.extract_strided_slice %122 {offsets = [0, 127], sizes = [8, 256], strides = [1, 1]} : vector<8x512xf32> to vector<8x256xf32>
    %139 = vector.extract_strided_slice %2 {offsets = [0, 0], sizes = [1, 256], strides = [1, 1]} : vector<3x256xf32> to vector<1x256xf32>
    %140 = vector.broadcast %139 : vector<1x256xf32> to vector<8x256xf32>
    %141 = arith.mulf %138, %140 : vector<8x256xf32>
    %c24_72 = arith.constant 24 : index
    %c0_73 = arith.constant 0 : index
    %142 = vector.load %arg18[%c24_72, %c0_73] : memref<72x256xf32, #tpu.memory_space<vmem>>, vector<8x256xf32>
    tpu.vector_store %arg18[%c24_72, %c0_73], %141 {strides = array<i32>} : memref<72x256xf32, #tpu.memory_space<vmem>>, vector<8x256xf32>,
    %143 = vector.extract_strided_slice %122 {offsets = [0, 128], sizes = [8, 256], strides = [1, 1]} : vector<8x512xf32> to vector<8x256xf32>
    %144 = vector.extract_strided_slice %2 {offsets = [1, 0], sizes = [1, 256], strides = [1, 1]} : vector<3x256xf32> to vector<1x256xf32>
    %145 = vector.broadcast %144 : vector<1x256xf32> to vector<8x256xf32>
    %146 = arith.mulf %143, %145 : vector<8x256xf32>
    %c32_74 = arith.constant 32 : index
    %c0_75 = arith.constant 0 : index
    %147 = vector.load %arg18[%c32_74, %c0_75] : memref<72x256xf32, #tpu.memory_space<vmem>>, vector<8x256xf32>
    tpu.vector_store %arg18[%c32_74, %c0_75], %146 {strides = array<i32>} : memref<72x256xf32, #tpu.memory_space<vmem>>, vector<8x256xf32>,
    %148 = vector.extract_strided_slice %122 {offsets = [0, 129], sizes = [8, 256], strides = [1, 1]} : vector<8x512xf32> to vector<8x256xf32>
    %149 = vector.extract_strided_slice %2 {offsets = [2, 0], sizes = [1, 256], strides = [1, 1]} : vector<3x256xf32> to vector<1x256xf32>
    %150 = vector.broadcast %149 : vector<1x256xf32> to vector<8x256xf32>
    %151 = arith.mulf %148, %150 : vector<8x256xf32>
    %c40_76 = arith.constant 40 : index
    %c0_77 = arith.constant 0 : index
    %152 = vector.load %arg18[%c40_76, %c0_77] : memref<72x256xf32, #tpu.memory_space<vmem>>, vector<8x256xf32>
    tpu.vector_store %arg18[%c40_76, %c0_77], %151 {strides = array<i32>} : memref<72x256xf32, #tpu.memory_space<vmem>>, vector<8x256xf32>,
    %153 = vector.extract_strided_slice %122 {offsets = [0, 143], sizes = [8, 256], strides = [1, 1]} : vector<8x512xf32> to vector<8x256xf32>
    %154 = vector.extract_strided_slice %2 {offsets = [0, 0], sizes = [1, 256], strides = [1, 1]} : vector<3x256xf32> to vector<1x256xf32>
    %155 = vector.broadcast %154 : vector<1x256xf32> to vector<8x256xf32>
    %156 = arith.mulf %153, %155 : vector<8x256xf32>
    %c48_78 = arith.constant 48 : index
    %c0_79 = arith.constant 0 : index
    %157 = vector.load %arg18[%c48_78, %c0_79] : memref<72x256xf32, #tpu.memory_space<vmem>>, vector<8x256xf32>
    tpu.vector_store %arg18[%c48_78, %c0_79], %156 {strides = array<i32>} : memref<72x256xf32, #tpu.memory_space<vmem>>, vector<8x256xf32>,
    %158 = vector.extract_strided_slice %122 {offsets = [0, 144], sizes = [8, 256], strides = [1, 1]} : vector<8x512xf32> to vector<8x256xf32>
    %159 = vector.extract_strided_slice %2 {offsets = [1, 0], sizes = [1, 256], strides = [1, 1]} : vector<3x256xf32> to vector<1x256xf32>
    %160 = vector.broadcast %159 : vector<1x256xf32> to vector<8x256xf32>
    %161 = arith.mulf %158, %160 : vector<8x256xf32>
    %c56_80 = arith.constant 56 : index
    %c0_81 = arith.constant 0 : index
    %162 = vector.load %arg18[%c56_80, %c0_81] : memref<72x256xf32, #tpu.memory_space<vmem>>, vector<8x256xf32>
    tpu.vector_store %arg18[%c56_80, %c0_81], %161 {strides = array<i32>} : memref<72x256xf32, #tpu.memory_space<vmem>>, vector<8x256xf32>,
    %163 = vector.extract_strided_slice %122 {offsets = [0, 145], sizes = [8, 256], strides = [1, 1]} : vector<8x512xf32> to vector<8x256xf32>
    %164 = vector.extract_strided_slice %2 {offsets = [2, 0], sizes = [1, 256], strides = [1, 1]} : vector<3x256xf32> to vector<1x256xf32>
    %165 = vector.broadcast %164 : vector<1x256xf32> to vector<8x256xf32>
    %166 = arith.mulf %163, %165 : vector<8x256xf32>
    %c64_82 = arith.constant 64 : index
    %c0_83 = arith.constant 0 : index
    %167 = vector.load %arg18[%c64_82, %c0_83] : memref<72x256xf32, #tpu.memory_space<vmem>>, vector<8x256xf32>
    tpu.vector_store %arg18[%c64_82, %c0_83], %166 {strides = array<i32>} : memref<72x256xf32, #tpu.memory_space<vmem>>, vector<8x256xf32>,
    %c0_84 = arith.constant 0 : index
    %c0_85 = arith.constant 0 : index
    %168 = vector.load %arg9[%c0_84, %c0_85] : memref<8x72xf32, #tpu.memory_space<vmem>>, vector<8x72xf32>
    %c0_86 = arith.constant 0 : index
    %c0_87 = arith.constant 0 : index
    %169 = vector.load %arg18[%c0_86, %c0_87] : memref<72x256xf32, #tpu.memory_space<vmem>>, vector<72x256xf32>
    %cst_88 = arith.constant dense<0.000000e+00> : vector<8x256xf32>
    %170 = tpu.matmul %168, %169, %cst_88 {dimension_numbers = #tpu.dot_dimension_numbers<[1], [0], [0], [1], [0, 0, 1, 1], [], []>} : vector<8x72xf32>, vector<72x256xf32>, vector<8x256xf32> -> vector<8x256xf32>
    %c0_89 = arith.constant 0 : index
    %c0_90 = arith.constant 0 : index
    %171 = vector.load %arg10[%c0_89, %c0_90] : memref<8x1xf32, #tpu.memory_space<vmem>>, vector<8x1xf32>
    %172 = vector.broadcast %171 : vector<8x1xf32> to vector<8x256xf32>
    %173 = arith.addf %170, %172 : vector<8x256xf32>
    %cst_91 = arith.constant 0.000000e+00 : f32
    %174 = vector.broadcast %cst_91 : f32 to vector<8x256xf32>
    %175 = arith.maximumf %173, %174 : vector<8x256xf32>
    %c0_92 = arith.constant 0 : index
    %c128_93 = arith.constant 128 : index
    %176 = vector.load %arg17[%c0_92, %c128_93] : memref<8x512xf32, #tpu.memory_space<vmem>>, vector<8x256xf32>
    tpu.vector_store %arg17[%c0_92, %c128_93], %175 {strides = array<i32>} : memref<8x512xf32, #tpu.memory_space<vmem>>, vector<8x256xf32>,
    %c0_94 = arith.constant 0 : index
    %c0_95 = arith.constant 0 : index
    %177 = vector.load %arg17[%c0_94, %c0_95] : memref<8x512xf32, #tpu.memory_space<vmem>>, vector<8x512xf32>
    %178 = vector.extract_strided_slice %177 {offsets = [0, 111], sizes = [8, 256], strides = [1, 1]} : vector<8x512xf32> to vector<8x256xf32>
    %179 = vector.extract_strided_slice %2 {offsets = [0, 0], sizes = [1, 256], strides = [1, 1]} : vector<3x256xf32> to vector<1x256xf32>
    %180 = vector.broadcast %179 : vector<1x256xf32> to vector<8x256xf32>
    %181 = arith.mulf %178, %180 : vector<8x256xf32>
    %c0_96 = arith.constant 0 : index
    %c0_97 = arith.constant 0 : index
    %182 = vector.load %arg18[%c0_96, %c0_97] : memref<72x256xf32, #tpu.memory_space<vmem>>, vector<8x256xf32>
    tpu.vector_store %arg18[%c0_96, %c0_97], %181 {strides = array<i32>} : memref<72x256xf32, #tpu.memory_space<vmem>>, vector<8x256xf32>,
    %183 = vector.extract_strided_slice %177 {offsets = [0, 112], sizes = [8, 256], strides = [1, 1]} : vector<8x512xf32> to vector<8x256xf32>
    %184 = vector.extract_strided_slice %2 {offsets = [1, 0], sizes = [1, 256], strides = [1, 1]} : vector<3x256xf32> to vector<1x256xf32>
    %185 = vector.broadcast %184 : vector<1x256xf32> to vector<8x256xf32>
    %186 = arith.mulf %183, %185 : vector<8x256xf32>
    %c8_98 = arith.constant 8 : index
    %c0_99 = arith.constant 0 : index
    %187 = vector.load %arg18[%c8_98, %c0_99] : memref<72x256xf32, #tpu.memory_space<vmem>>, vector<8x256xf32>
    tpu.vector_store %arg18[%c8_98, %c0_99], %186 {strides = array<i32>} : memref<72x256xf32, #tpu.memory_space<vmem>>, vector<8x256xf32>,
    %188 = vector.extract_strided_slice %177 {offsets = [0, 113], sizes = [8, 256], strides = [1, 1]} : vector<8x512xf32> to vector<8x256xf32>
    %189 = vector.extract_strided_slice %2 {offsets = [2, 0], sizes = [1, 256], strides = [1, 1]} : vector<3x256xf32> to vector<1x256xf32>
    %190 = vector.broadcast %189 : vector<1x256xf32> to vector<8x256xf32>
    %191 = arith.mulf %188, %190 : vector<8x256xf32>
    %c16_100 = arith.constant 16 : index
    %c0_101 = arith.constant 0 : index
    %192 = vector.load %arg18[%c16_100, %c0_101] : memref<72x256xf32, #tpu.memory_space<vmem>>, vector<8x256xf32>
    tpu.vector_store %arg18[%c16_100, %c0_101], %191 {strides = array<i32>} : memref<72x256xf32, #tpu.memory_space<vmem>>, vector<8x256xf32>,
    %193 = vector.extract_strided_slice %177 {offsets = [0, 127], sizes = [8, 256], strides = [1, 1]} : vector<8x512xf32> to vector<8x256xf32>
    %194 = vector.extract_strided_slice %2 {offsets = [0, 0], sizes = [1, 256], strides = [1, 1]} : vector<3x256xf32> to vector<1x256xf32>
    %195 = vector.broadcast %194 : vector<1x256xf32> to vector<8x256xf32>
    %196 = arith.mulf %193, %195 : vector<8x256xf32>
    %c24_102 = arith.constant 24 : index
    %c0_103 = arith.constant 0 : index
    %197 = vector.load %arg18[%c24_102, %c0_103] : memref<72x256xf32, #tpu.memory_space<vmem>>, vector<8x256xf32>
    tpu.vector_store %arg18[%c24_102, %c0_103], %196 {strides = array<i32>} : memref<72x256xf32, #tpu.memory_space<vmem>>, vector<8x256xf32>,
    %198 = vector.extract_strided_slice %177 {offsets = [0, 128], sizes = [8, 256], strides = [1, 1]} : vector<8x512xf32> to vector<8x256xf32>
    %199 = vector.extract_strided_slice %2 {offsets = [1, 0], sizes = [1, 256], strides = [1, 1]} : vector<3x256xf32> to vector<1x256xf32>
    %200 = vector.broadcast %199 : vector<1x256xf32> to vector<8x256xf32>
    %201 = arith.mulf %198, %200 : vector<8x256xf32>
    %c32_104 = arith.constant 32 : index
    %c0_105 = arith.constant 0 : index
    %202 = vector.load %arg18[%c32_104, %c0_105] : memref<72x256xf32, #tpu.memory_space<vmem>>, vector<8x256xf32>
    tpu.vector_store %arg18[%c32_104, %c0_105], %201 {strides = array<i32>} : memref<72x256xf32, #tpu.memory_space<vmem>>, vector<8x256xf32>,
    %203 = vector.extract_strided_slice %177 {offsets = [0, 129], sizes = [8, 256], strides = [1, 1]} : vector<8x512xf32> to vector<8x256xf32>
    %204 = vector.extract_strided_slice %2 {offsets = [2, 0], sizes = [1, 256], strides = [1, 1]} : vector<3x256xf32> to vector<1x256xf32>
    %205 = vector.broadcast %204 : vector<1x256xf32> to vector<8x256xf32>
    %206 = arith.mulf %203, %205 : vector<8x256xf32>
    %c40_106 = arith.constant 40 : index
    %c0_107 = arith.constant 0 : index
    %207 = vector.load %arg18[%c40_106, %c0_107] : memref<72x256xf32, #tpu.memory_space<vmem>>, vector<8x256xf32>
    tpu.vector_store %arg18[%c40_106, %c0_107], %206 {strides = array<i32>} : memref<72x256xf32, #tpu.memory_space<vmem>>, vector<8x256xf32>,
    %208 = vector.extract_strided_slice %177 {offsets = [0, 143], sizes = [8, 256], strides = [1, 1]} : vector<8x512xf32> to vector<8x256xf32>
    %209 = vector.extract_strided_slice %2 {offsets = [0, 0], sizes = [1, 256], strides = [1, 1]} : vector<3x256xf32> to vector<1x256xf32>
    %210 = vector.broadcast %209 : vector<1x256xf32> to vector<8x256xf32>
    %211 = arith.mulf %208, %210 : vector<8x256xf32>
    %c48_108 = arith.constant 48 : index
    %c0_109 = arith.constant 0 : index
    %212 = vector.load %arg18[%c48_108, %c0_109] : memref<72x256xf32, #tpu.memory_space<vmem>>, vector<8x256xf32>
    tpu.vector_store %arg18[%c48_108, %c0_109], %211 {strides = array<i32>} : memref<72x256xf32, #tpu.memory_space<vmem>>, vector<8x256xf32>,
    %213 = vector.extract_strided_slice %177 {offsets = [0, 144], sizes = [8, 256], strides = [1, 1]} : vector<8x512xf32> to vector<8x256xf32>
    %214 = vector.extract_strided_slice %2 {offsets = [1, 0], sizes = [1, 256], strides = [1, 1]} : vector<3x256xf32> to vector<1x256xf32>
    %215 = vector.broadcast %214 : vector<1x256xf32> to vector<8x256xf32>
    %216 = arith.mulf %213, %215 : vector<8x256xf32>
    %c56_110 = arith.constant 56 : index
    %c0_111 = arith.constant 0 : index
    %217 = vector.load %arg18[%c56_110, %c0_111] : memref<72x256xf32, #tpu.memory_space<vmem>>, vector<8x256xf32>
    tpu.vector_store %arg18[%c56_110, %c0_111], %216 {strides = array<i32>} : memref<72x256xf32, #tpu.memory_space<vmem>>, vector<8x256xf32>,
    %218 = vector.extract_strided_slice %177 {offsets = [0, 145], sizes = [8, 256], strides = [1, 1]} : vector<8x512xf32> to vector<8x256xf32>
    %219 = vector.extract_strided_slice %2 {offsets = [2, 0], sizes = [1, 256], strides = [1, 1]} : vector<3x256xf32> to vector<1x256xf32>
    %220 = vector.broadcast %219 : vector<1x256xf32> to vector<8x256xf32>
    %221 = arith.mulf %218, %220 : vector<8x256xf32>
    %c64_112 = arith.constant 64 : index
    %c0_113 = arith.constant 0 : index
    %222 = vector.load %arg18[%c64_112, %c0_113] : memref<72x256xf32, #tpu.memory_space<vmem>>, vector<8x256xf32>
    tpu.vector_store %arg18[%c64_112, %c0_113], %221 {strides = array<i32>} : memref<72x256xf32, #tpu.memory_space<vmem>>, vector<8x256xf32>,
    %c0_114 = arith.constant 0 : index
    %c0_115 = arith.constant 0 : index
    %223 = vector.load %arg11[%c0_114, %c0_115] : memref<8x72xf32, #tpu.memory_space<vmem>>, vector<8x72xf32>
    %c0_116 = arith.constant 0 : index
    %c0_117 = arith.constant 0 : index
    %224 = vector.load %arg18[%c0_116, %c0_117] : memref<72x256xf32, #tpu.memory_space<vmem>>, vector<72x256xf32>
    %cst_118 = arith.constant dense<0.000000e+00> : vector<8x256xf32>
    %225 = tpu.matmul %223, %224, %cst_118 {dimension_numbers = #tpu.dot_dimension_numbers<[1], [0], [0], [1], [0, 0, 1, 1], [], []>} : vector<8x72xf32>, vector<72x256xf32>, vector<8x256xf32> -> vector<8x256xf32>
    %c0_119 = arith.constant 0 : index
    %c0_120 = arith.constant 0 : index
    %226 = vector.load %arg12[%c0_119, %c0_120] : memref<8x1xf32, #tpu.memory_space<vmem>>, vector<8x1xf32>
    %227 = vector.broadcast %226 : vector<8x1xf32> to vector<8x256xf32>
    %228 = arith.addf %225, %227 : vector<8x256xf32>
    %229 = arith.addf %228, %120 : vector<8x256xf32>
    %cst_121 = arith.constant 0.000000e+00 : f32
    %230 = vector.broadcast %cst_121 : f32 to vector<8x256xf32>
    %231 = arith.maximumf %229, %230 : vector<8x256xf32>
    %c0_122 = arith.constant 0 : index
    %c0_123 = arith.constant 0 : index
    %232 = vector.load %arg13[%c0_122, %c0_123] : memref<8x8xf32, #tpu.memory_space<vmem>>, vector<8x8xf32>
    %cst_124 = arith.constant dense<0.000000e+00> : vector<8x256xf32>
    %233 = tpu.matmul %232, %120, %cst_124 {dimension_numbers = #tpu.dot_dimension_numbers<[1], [0], [0], [1], [0, 0, 1, 1], [], []>} : vector<8x8xf32>, vector<8x256xf32>, vector<8x256xf32> -> vector<8x256xf32>
    %c0_125 = arith.constant 0 : index
    %c0_126 = arith.constant 0 : index
    %234 = vector.load %arg14[%c0_125, %c0_126] : memref<8x8xf32, #tpu.memory_space<vmem>>, vector<8x8xf32>
    %cst_127 = arith.constant dense<0.000000e+00> : vector<8x256xf32>
    %235 = tpu.matmul %234, %231, %cst_127 {dimension_numbers = #tpu.dot_dimension_numbers<[1], [0], [0], [1], [0, 0, 1, 1], [], []>} : vector<8x8xf32>, vector<8x256xf32>, vector<8x256xf32> -> vector<8x256xf32>
    %236 = arith.addf %233, %235 : vector<8x256xf32>
    %c0_128 = arith.constant 0 : index
    %c0_129 = arith.constant 0 : index
    %237 = vector.load %arg15[%c0_128, %c0_129] : memref<8x1xf32, #tpu.memory_space<vmem>>, vector<8x1xf32>
    %238 = vector.broadcast %237 : vector<8x1xf32> to vector<8x256xf32>
    %239 = arith.addf %236, %238 : vector<8x256xf32>
    %cst_130 = arith.constant 0.000000e+00 : f32
    %240 = vector.broadcast %cst_130 : f32 to vector<8x256xf32>
    %241 = arith.maximumf %239, %240 : vector<8x256xf32>
    %c0_131 = arith.constant 0 : index
    %c0_132 = arith.constant 0 : index
    %c0_133 = arith.constant 0 : index
    %242 = vector.load %arg16[%c0_131, %c0_132, %c0_133] : memref<1x8x256xf32, #tpu.memory_space<vmem>>, vector<1x8x256xf32>
    %243 = vector.shape_cast %242 : vector<1x8x256xf32> to vector<8x256xf32>
    %244 = vector.shape_cast %241 : vector<8x256xf32> to vector<1x8x256xf32>
    tpu.vector_store %arg16[%c0_131, %c0_132, %c0_133], %244 {strides = array<i32>} : memref<1x8x256xf32, #tpu.memory_space<vmem>>, vector<1x8x256xf32>,
    return
  }
  func.func @transform_0(%arg0: i32) -> (i32, i32, i32) {
    %c0_i32 = arith.constant 0 : i32
    %c0_i32_0 = arith.constant 0 : i32
    %c0_i32_1 = arith.constant 0 : i32
    return %arg0, %c0_i32, %c0_i32_0 : i32, i32, i32
  }
  func.func @transform_1(%arg0: i32) -> (i32, i32) {
    %c0_i32 = arith.constant 0 : i32
    %c0_i32_0 = arith.constant 0 : i32
    %c0_i32_1 = arith.constant 0 : i32
    return %c0_i32, %c0_i32_0 : i32, i32
  }
  func.func @transform_2(%arg0: i32) -> (i32, i32) {
    %c0_i32 = arith.constant 0 : i32
    %c0_i32_0 = arith.constant 0 : i32
    %c0_i32_1 = arith.constant 0 : i32
    return %c0_i32, %c0_i32_0 : i32, i32
  }
  func.func @transform_3(%arg0: i32) -> (i32, i32) {
    %c0_i32 = arith.constant 0 : i32
    %c0_i32_0 = arith.constant 0 : i32
    %c0_i32_1 = arith.constant 0 : i32
    return %c0_i32, %c0_i32_0 : i32, i32
  }
  func.func @transform_4(%arg0: i32) -> (i32, i32) {
    %c0_i32 = arith.constant 0 : i32
    %c0_i32_0 = arith.constant 0 : i32
    %c0_i32_1 = arith.constant 0 : i32
    return %c0_i32, %c0_i32_0 : i32, i32
  }
  func.func @transform_5(%arg0: i32) -> (i32, i32) {
    %c0_i32 = arith.constant 0 : i32
    %c0_i32_0 = arith.constant 0 : i32
    %c0_i32_1 = arith.constant 0 : i32
    return %c0_i32, %c0_i32_0 : i32, i32
  }
  func.func @transform_6(%arg0: i32) -> (i32, i32) {
    %c0_i32 = arith.constant 0 : i32
    %c0_i32_0 = arith.constant 0 : i32
    %c0_i32_1 = arith.constant 0 : i32
    return %c0_i32, %c0_i32_0 : i32, i32
  }
  func.func @transform_7(%arg0: i32) -> (i32, i32) {
    %c0_i32 = arith.constant 0 : i32
    %c0_i32_0 = arith.constant 0 : i32
    %c0_i32_1 = arith.constant 0 : i32
    return %c0_i32, %c0_i32_0 : i32, i32
  }
  func.func @transform_8(%arg0: i32) -> (i32, i32) {
    %c0_i32 = arith.constant 0 : i32
    %c0_i32_0 = arith.constant 0 : i32
    %c0_i32_1 = arith.constant 0 : i32
    return %c0_i32, %c0_i32_0 : i32, i32
  }
  func.func @transform_9(%arg0: i32) -> (i32, i32) {
    %c0_i32 = arith.constant 0 : i32
    %c0_i32_0 = arith.constant 0 : i32
    %c0_i32_1 = arith.constant 0 : i32
    return %c0_i32, %c0_i32_0 : i32, i32
  }
  func.func @transform_10(%arg0: i32) -> (i32, i32) {
    %c0_i32 = arith.constant 0 : i32
    %c0_i32_0 = arith.constant 0 : i32
    %c0_i32_1 = arith.constant 0 : i32
    return %c0_i32, %c0_i32_0 : i32, i32
  }
  func.func @transform_11(%arg0: i32) -> (i32, i32) {
    %c0_i32 = arith.constant 0 : i32
    %c0_i32_0 = arith.constant 0 : i32
    %c0_i32_1 = arith.constant 0 : i32
    return %c0_i32, %c0_i32_0 : i32, i32
  }
  func.func @transform_12(%arg0: i32) -> (i32, i32) {
    %c0_i32 = arith.constant 0 : i32
    %c0_i32_0 = arith.constant 0 : i32
    %c0_i32_1 = arith.constant 0 : i32
    return %c0_i32, %c0_i32_0 : i32, i32
  }
  func.func @transform_13(%arg0: i32) -> (i32, i32) {
    %c0_i32 = arith.constant 0 : i32
    %c0_i32_0 = arith.constant 0 : i32
    %c0_i32_1 = arith.constant 0 : i32
    return %c0_i32, %c0_i32_0 : i32, i32
  }
  func.func @transform_14(%arg0: i32) -> (i32, i32) {
    %c0_i32 = arith.constant 0 : i32
    %c0_i32_0 = arith.constant 0 : i32
    %c0_i32_1 = arith.constant 0 : i32
    return %c0_i32, %c0_i32_0 : i32, i32
  }
  func.func @transform_15(%arg0: i32) -> (i32, i32, i32) {
    %c0_i32 = arith.constant 0 : i32
    %c0_i32_0 = arith.constant 0 : i32
    %c0_i32_1 = arith.constant 0 : i32
    return %arg0, %c0_i32, %c0_i32_0 : i32, i32, i32
  }
}

</mosaic_0001>

<bundles_post_ra>
// kernel: tpu_custom_call.1
= control target key start
LH: loop header
LB: loop body
LE: loop exit
PB: predicated region body
PF: predicated region fallthrough
CT: control target
= control target key end

     0   :  { %s2989_s0 = inlined_call_operand.vmem [shape: f32[2,8,256], index: 0, kind: input, shape index: {}]   ;;  %s2990_s1 = inlined_call_operand.vmem [shape: f32[3,256], index: 1, kind: input, shape index: {}]   ;;  %s2991_s2 = inlined_call_operand.vmem [shape: f32[8,72], index: 2, kind: input, shape index: {}]   ;;  %s2992_s3 = inlined_call_operand.vmem [shape: f32[8,1], index: 3, kind: input, shape index: {}]   ;;  %s2993_s4 = inlined_call_operand.vmem [shape: f32[8,72], index: 4, kind: input, shape index: {}]   ;;  %s2994_s5 = inlined_call_operand.vmem [shape: f32[8,1], index: 5, kind: input, shape index: {}]   ;;  %s2995_s6 = inlined_call_operand.vmem [shape: f32[8,8], index: 6, kind: input, shape index: {}]   ;;  %s2996_s7 = inlined_call_operand.vmem [shape: f32[8,1], index: 7, kind: input, shape index: {}]   ;;  %s2997_s8 = inlined_call_operand.vmem [shape: f32[8,72], index: 8, kind: input, shape index: {}]   ;;  %s2998_s9 = inlined_call_operand.vmem [shape: f32[8,1], index: 9, kind: input, shape index: {}]   ;;  %s2999_s10 = inlined_call_operand.vmem [shape: f32[8,72], index: 10, kind: input, shape index: {}]   ;;  %s3000_s11 = inlined_call_operand.vmem [shape: f32[8,1], index: 11, kind: input, shape index: {}]   ;;  %s3001_s12 = inlined_call_operand.vmem [shape: f32[8,8], index: 12, kind: input, shape index: {}]   ;;  %s3002_s13 = inlined_call_operand.vmem [shape: f32[8,8], index: 13, kind: input, shape index: {}]   ;;  %s3003_s14 = inlined_call_operand.vmem [shape: f32[8,1], index: 14, kind: input, shape index: {}]   ;;  %s3004_s15 = inlined_call_operand.hbm [shape: f32[2,8,256], index: 15, kind: output, shape index: {}]  }
   0x1   :  { %3022 = sst [smem:[#allocation9_spill]] %s2989_s0 }
   0x2   :  { %3023 = sst [smem:[#allocation10_spill]] %s2990_s1 }
   0x3   :  { %3024 = sst [smem:[#allocation11_spill]] %s2991_s2 }
   0x4   :  { %3025 = sst [smem:[#allocation12_spill]] %s2992_s3 }
   0x5   :  { %20 = vsyncpa [#allocation5], 0 }
   0x6   :  { %22 = vsyncpa [#allocation5 + $0x1], 0  ;;  %s2415_s18 = smov 0   ;;  %s2417_s19 = smov 0  }
   0x7   :  { %s2419_s20 = smov 0   ;;  %s2421_s21 = smov 0  }
   0x8 LB: > { %3026 = sst [smem:[#allocation7_spill]] %s2318_s20  ;;  %s2436_s22 = sadd.s32 4294967295, %s2322_s21   ;;  %s2322_s21 = sphi %s2421_s21, %s3046_s21   ;;  %s2318_s20 = sphi %s2419_s20, %s3043_s20   ;;  %s2314_s19 = sphi %s2417_s19, %s3045_s19   ;;  %s2310_s18 = sphi %s2415_s18, %s3044_s18  }
   0x9   : > { %s1976_s23 = sadd.s32 4294967294, %s2322_s21   ;;  %s2440_s24 = sadd.s32 1, %s2322_s21  }
   0xa   : > { %s355_s25 = sadd.s32 1, %s2318_s20  ;;  %s352_s26 = ssub.s32 %s2322_s21, %s2440_s24 }
   0xb   : > { %p365_p0 = scmp.ne.s32.totalorder %s2318_s20, %s2314_s19  ;;  %p353_p1 = scmp.eq.s32.totalorder %s352_s26, 0 }
   0xc   : > { %p366_p2 = scmp.eq.s32.totalorder %s2436_s22, 1  ;;  %p371_p3 = scmp.ne.s32.totalorder %s2314_s19, %s2310_s18 }
   0xd   : > { %p372_p4 = scmp.eq.s32.totalorder %s1976_s23, 1  ;;  %p1979_p7 = scmp.ge.s32.totalorder %s2322_s21, 1 }
   0xe   : > { %s2451_s27 = scalar_select %p353_p1, %s2318_s20, %s355_s25  }
   0xf   : > { %p2453_p5 = por %p366_p2, %p365_p0  ;;  %p2457_p6 = por %p372_p4, %p371_p3 }
  0x10   : > { %3027 = sst [smem:[#allocation8_spill]] %s2451_s27  ;;  %p440_p8 = scmp.lt.s32.totalorder %s2322_s21, 3 }
  0x12   : > { %p441_p9 = pnand %p1979_p7, %p440_p8 }
  0x13   : > { %v507_v0 = vlaneseq (!%p441_p9)  ;;  %s3030_s1 = sld [smem:[#allocation10_spill]] (!%p441_p9)  ;;  %s3007_s17 = smov (!%p441_p9), 112   ;;  %v2331_v21 = vmov (!%p441_p9), 0   ;;  %vm531_vm0 = vcmask (!%p441_p9), 908288   ;;  %vm579_vm1 = vcmask (!%p441_p9), 916480  }
  0x14   : > { %444 = sbr.rel (%p441_p9) target bundleno = 1860 (0x744), region = 80  ;;  %s3005_s23 = smov (!%p441_p9), 111   ;;  %2153 = vset.pattern.permute.xlu1 (!%p441_p9), %v2331_v21  ;;  %2189 = vset.pattern.permute.xlu0 (!%p441_p9), %v2331_v21  ;;  %vm627_vm2 = vcmask (!%p441_p9), 924672   ;;  %vm655_vm3 = vcmask (!%p441_p9), 1039360   ;;  %vm672_vm4 = vcmask (!%p441_p9), 7168   ;;  %vm644_vm5 = vcmask (!%p441_p9), 121856  }
  0x15   : > { %v508_v1 = vshrl.u32 (!%p441_p9), %v507_v0, 7  ;;  %s3011_s25 = smov (!%p441_p9), 113   ;;  %s3009_s26 = smov (!%p441_p9), 127   ;;  %vm596_vm6 = vcmask (!%p441_p9), 130048   ;;  %vm548_vm7 = vcmask (!%p441_p9), 138240   ;;  %vm812_vm8 = vcmask (!%p441_p9), 588800  }
  0x16   : > { %s3013_s30 = smov (!%p441_p9), 1   ;;  %s3015_s16 = smov (!%p441_p9), 15   ;;  %vm1149_vm9 = vcmask (!%p441_p9), 64512  }
  0x17   : > { %v557_v3 = vsub.s32 (!%p441_p9), 1, %v508_v1  ;;  %v509_v4 = vsub.s32 (!%p441_p9), 0, %v508_v1  ;;  %v561_v5 = vsub.s32 (!%p441_p9), 5, %v508_v1  ;;  %v513_v6 = vsub.s32 (!%p441_p9), 4, %v508_v1  ;;  %p488_p10 = scmp.lt.s32.totalorder (!%p441_p9), %s2436_s22, 1  ;;  %s3031_s0 = sld [smem:[#allocation9_spill]] (!%p441_p9) }
  0x18   : > { %v605_v7 = vsub.s32 (!%p441_p9), 2, %v508_v1  ;;  %v609_v8 = vsub.s32 (!%p441_p9), 6, %v508_v1  ;;  %s3038_s3 = sld [smem:[#allocation12_spill]] (!%p441_p9)  ;;  %s3039_s27 = smov (!%p441_p9), 17  }
  0x19   : > { %v497_v2 = vld [vmem:[%s3030_s1] sm:$0x77] (!%p441_p9)  ;;  %s3040_s20 = smov (!%p441_p9), 16   ;;  %s3041_s2 = sld [smem:[#allocation11_spill]] (!%p441_p9) }
  0x1a   : > { %v558_v9 = vrot.slane (!%p441_p9), %v497_v2, %v557_v3  ;;  %v510_v10 = vrot.slane (!%p441_p9), %v497_v2, %v509_v4  ;;  %v562_v11 = vrot.slane (!%p441_p9), %v497_v2, %v561_v5  ;;  %v514_v12 = vrot.slane (!%p441_p9), %v497_v2, %v513_v6 }
  0x1b   : > { %v610_v15 = vrot.slane %v497_v2, %v609_v8  ;;  %v606_v18 = vrot.slane %v497_v2, %v605_v7 }
  0x1c   : > { %v2466_v13 = vrot.slane %v558_v9, %v557_v3  ;;  %v520_v14 = vrot.slane %v510_v10, %v509_v4  ;;  %v2471_v16 = vrot.slane %v562_v11, %v557_v3  ;;  %v524_v17 = vrot.slane %v514_v12, %v509_v4 }
  0x1d   : > { %v620_v19 = vrot.slane %v610_v15, %v605_v7  ;;  %v616_v20 = vrot.slane %v606_v18, %v605_v7  ;;  %v2333_v9 = vmov 0.0  }
  0x1e   : > { %575 = vrot.lane.b32.xlu1 %v2466_v13, %s3007_s17  ;;  %527 = vrot.lane.b32.xlu0 %v520_v14, %s3005_s23  ;;  %v806_v18 = vld [vmem:[%s3038_s3] sm:$0xff] }
  0x1f   : > { %880 = vmatprep.mubr.f32.mxu0 %v2333_v9  ;;  %1135 = vmatprep.mubr.f32.mxu1 %v2333_v9 }
  0x22   : > { %577 = vrot.lane.b32.xlu1 %v2471_v16, %s3007_s17  ;;  %529 = vrot.lane.b32.xlu0 %v524_v17, %s3005_s23  ;;  %s3017_s23 = smov 16   ;;  %s3019_s17 = smov 17  }
  0x26   : > { %625 = vrot.lane.b32.xlu1 %v620_v19, %s3011_s25  ;;  %623 = vrot.lane.b32.xlu0 %v616_v20, %s3011_s25 }
  0x2a   : > { %653 = vrot.lane.b32.xlu1 %v524_v17, %s3009_s26  ;;  %651 = vrot.lane.b32.xlu0 %v520_v14, %s3009_s26  ;;  %s489_s26 = scalar_select %p488_p10, %s2436_s22, 1 }
  0x2c   : > { %s1995_s25 = sshll.u32 %s489_s26, 4  ;;  %s3034_s26 = smov 113  }
  0x2d   : > { %s492_s1 = scalar_lea.vmem %s3031_s0, %s1995_s25  ;;  %s3033_s25 = smov 1  }
  0x2e   : > { %685 = vrot.lane.b32.xlu1 %v620_v19, %s3013_s30  ;;  %683 = vrot.lane.b32.xlu0 %v616_v20, %s3013_s30  ;;  %v2511_v29 = vld [vmem:[%s492_s1] sm:$0xff]  ;;  %v2513_v30 = vld [vmem:[%s492_s1 + $0x8] sm:$0xff]  ;;  %s3032_s1 = smov 15   ;;  %s3035_s30 = smov 127  }
  0x2f   : > { %s485_s0 = sand.u32 1, %s2314_s19  }
  0x32   : > { %711 = vrot.lane.b32.xlu1 %v524_v17, %s3015_s16  ;;  %709 = vrot.lane.b32.xlu0 %v520_v14, %s3015_s16  ;;  %s3036_s16 = smov 112  }
  0x36   : > { %737 = vrot.lane.b32.xlu1 %v2471_v16, %s3017_s23  ;;  %735 = vrot.lane.b32.xlu0 %v2466_v13, %s3017_s23 }
  0x3a   : > { %763 = vrot.lane.b32.xlu1 %v620_v19, %s3019_s17  ;;  %761 = vrot.lane.b32.xlu0 %v616_v20, %s3019_s17 }
  0x90   : > { %v576_v22 = vpop.permute.xlu1 %575  ;;  %v528_v23 = vpop.permute.xlu0 %527 }
  0x91   : > { %v2492_v24 = vmul.f32 0.0, %v576_v22  ;;  %v2494_v25 = vmul.f32 0.0, %v528_v23 }
  0x93   : > { %542 = vrot.lane.b32.xlu0 %v2494_v25, %s3019_s17  ;;  %590 = vrot.lane.b32.xlu1 %v2492_v24, %s3017_s23 }
  0x94   : > { %v2503_v26 = vpop.permute.xlu1 %577  ;;  %v2505_v27 = vpop.permute.xlu0 %529 }
  0x95   : > { %v2509_v28 = vsel %vm531_vm0, %v528_v23, %v2505_v27  ;;  %v2519_v33 = vsel %vm579_vm1, %v576_v22, %v2503_v26  ;;  %v538_v36 = vmul.f32 %v2505_v27, %v2513_v30  ;;  %v586_v41 = vmul.f32 %v2503_v26, %v2513_v30 }
  0x96   : > { %v537_v35 = vmul.f32 %v2509_v28, %v2511_v29  ;;  %v585_v40 = vmul.f32 %v2519_v33, %v2511_v29 }
  0x98   : > { %v2515_v31 = vpop.permute.xlu1 %625  ;;  %v624_v32 = vpop.permute.xlu0 %623  ;;  %v2118_v44 = vpack.i.bf16 %v538_v36, %v537_v35  ;;  %v2123_v49 = vpack.i.bf16 %v586_v41, %v585_v40 }
  0x99   : > { %v2521_v34 = vmul.f32 0.0, %v624_v32  ;;  %v2529_v37 = vsel %vm627_vm2, %v624_v32, %v2515_v31  ;;  %v634_v45 = vmul.f32 %v2515_v31, %v2513_v30 }
  0x9a   : > { %v633_v42 = vmul.f32 %v2529_v37, %v2511_v29 }
  0x9b   : > { %638 = vrot.lane.b32.xlu0 %v2521_v34, %s3032_s1 }
  0x9c   : > { %v2533_v38 = vpop.permute.xlu1 %653  ;;  %v652_v39 = vpop.permute.xlu0 %651  ;;  %v2128_v52 = vpack.i.bf16 %v634_v45, %v633_v42 }
  0x9d   : > { %v2541_v43 = vmul.f32 0.0, %v652_v39  ;;  %v2547_v46 = vsel %vm655_vm3, %v652_v39, %v2533_v38  ;;  %v662_v53 = vmul.f32 %v2533_v38, %v2513_v30 }
  0x9e   : > { %v661_v50 = vmul.f32 %v2547_v46, %v2511_v29 }
  0x9f   : > { %666 = vrot.lane.b32.xlu1 %v2541_v43, %s3033_s25  ;;  %2119 = vrot.lane.b32.xlu0 %v2118_v44, %s3019_s17  ;;  %s1980_s17 = sshll.u32 %s485_s0, 4 }
  0xa0   : > { %v686_v47 = vpop.permute.xlu1 %685  ;;  %v2552_v48 = vpop.permute.xlu0 %683  ;;  %v2133_v58 = vpack.i.bf16 %v662_v53, %v661_v50 }
  0xa1   : > { %v2558_v51 = vsel %vm672_vm4, %v2552_v48, %v686_v47  ;;  %v2564_v54 = vmul.f32 0.0, %v686_v47  ;;  %v691_v63 = vmul.f32 %v2552_v48, %v2511_v29 }
  0xa2   : > { %v692_v57 = vmul.f32 %v2558_v51, %v2513_v30 }
  0xa3   : > { %2124 = vrot.lane.b32.xlu1 %v2123_v49, %s3017_s23  ;;  %2129 = vrot.lane.b32.xlu0 %v2128_v52, %s3032_s1  ;;  %s3037_s23 = smov 111  }
  0xa4   : > { %v712_v55 = vpop.permute.xlu1 %711  ;;  %v2566_v56 = vpop.permute.xlu0 %709  ;;  %v2138_v0 = vpack.i.bf16 %v2564_v54, %v692_v57 }
  0xa5   : > { %v717_v59 = vmul.f32 %v2566_v56, %v2511_v29  ;;  %v2574_v60 = vsel %vm644_vm5, %v2566_v56, %v712_v55  ;;  %v2583_v1 = vmul.f32 0.0, %v712_v55 }
  0xa6   : > { %v718_v4 = vmul.f32 %v2574_v60, %v2513_v30 }
  0xa7   : > { %2134 = vrot.lane.b32.xlu1 %v2133_v58, %s3033_s25  ;;  %723 = vrot.lane.b32.xlu0 %v717_v59, %s3034_s26 }
  0xa8   : > { %v738_v61 = vpop.permute.xlu1 %737  ;;  %v2578_v62 = vpop.permute.xlu0 %735  ;;  %v2143_v10 = vpack.i.bf16 %v2583_v1, %v718_v4 }
  0xa9   : > { %v2585_v2 = vmul.f32 0.0, %v738_v61  ;;  %v2589_v3 = vsel %vm596_vm6, %v2578_v62, %v738_v61  ;;  %v743_v14 = vmul.f32 %v2578_v62, %v2511_v29 }
  0xaa   : > { %v744_v5 = vmul.f32 %v2589_v3, %v2513_v30 }
  0xab   : > { %697 = vrot.lane.b32.xlu1 %v691_v63, %s3035_s30  ;;  %2139 = vrot.lane.b32.xlu0 %v2138_v0, %s3035_s30 }
  0xac   : > { %v764_v6 = vpop.permute.xlu1 %763  ;;  %v2597_v7 = vpop.permute.xlu0 %761  ;;  %v2148_v8 = vpack.i.bf16 %v2585_v2, %v744_v5 }
  0xad   : > { %v2605_v11 = vsel %vm548_vm7, %v2597_v7, %v764_v6  ;;  %v2615_v15 = vmul.f32 0.0, %v764_v6  ;;  %v769_v17 = vmul.f32 %v2597_v7, %v2511_v29 }
  0xae   : > { %v770_v12 = vmul.f32 %v2605_v11, %v2513_v30 }
  0xaf   : > { %2149 = vrot.lane.b32.xlu1 %v2148_v8, %s3036_s16  ;;  %2144 = vrot.lane.b32.xlu0 %v2143_v10, %s3034_s26 }
  0xb3   : > { %749 = vrot.lane.b32.xlu1 %v743_v14, %s3036_s16  ;;  %777 = vrot.lane.b32.xlu0 %v770_v12, %s3037_s23  ;;  %v680_v12 = vmul.f32 %v2471_v16, %v2513_v30  ;;  %v679_v14 = vmul.f32 %v2466_v13, %v2511_v29 }
  0xb7   : > { %779 = vrot.lane.b32.xlu1 %v2615_v15, %s3037_s23  ;;  %775 = vrot.lane.b32.xlu0 %v769_v17, %s3037_s23 }
  0xbb   : > { %809 = vperm.xlu1 %2153, %v806_v18   ;;  %901 = vrot.lane.b32.xlu0 %v2494_v25, %s3039_s27 }
  0xbf   : > { %919 = vrot.lane.b32.xlu1 %v2492_v24, %s3040_s20  ;;  %937 = vrot.lane.b32.xlu0 %v2521_v34, %s3032_s1 }
  0xc3   : > { %955 = vrot.lane.b32.xlu1 %v2541_v43, %s3033_s25 }
 0x105   : > { %v543_v19 = vpop.permute.xlu0 %542  ;;  %v591_v20 = vpop.permute.xlu1 %590 }
 0x10d   : > { %v639_v21 = vpop.permute.xlu0 %638 }
 0x111   : > { %v667_v22 = vpop.permute.xlu1 %666  ;;  %v2120_v23 = vpop.permute.xlu0 %2119 }
 0x112   : > { %v2122_v32 = vunpack.i.h.bf16 %v2120_v23  ;;  %v2121_v35 = vunpack.i.l.bf16 %v2120_v23 }
 0x114   : > { %v550_v42 = vsel %vm548_vm7, %v2121_v35, %v2122_v32  ;;  %v549_v44 = vsel %vm548_vm7, %v543_v19, %v2121_v35 }
 0x115   : > { %v2125_v36 = vpop.permute.xlu1 %2124  ;;  %v2130_v39 = vpop.permute.xlu0 %2129 }
 0x116   : > { %v2127_v40 = vunpack.i.h.bf16 %v2125_v36  ;;  %v2126_v41 = vunpack.i.l.bf16 %v2125_v36  ;;  %v2132_v45 = vunpack.i.h.bf16 %v2130_v39  ;;  %v2131_v47 = vunpack.i.l.bf16 %v2130_v39 }
 0x118   : > { %v598_v49 = vsel %vm596_vm6, %v2126_v41, %v2127_v40  ;;  %v597_v50 = vsel %vm596_vm6, %v591_v20, %v2126_v41  ;;  %v646_v61 = vsel %vm644_vm5, %v2131_v47, %v2132_v45  ;;  %v645_v0 = vsel %vm644_vm5, %v639_v21, %v2131_v47 }
 0x119   : > { %v2135_v52 = vpop.permute.xlu1 %2134  ;;  %v724_v53 = vpop.permute.xlu0 %723  ;;  %v1997_v55 = vpack.c.bf16 %v598_v49, %v550_v42  ;;  %v1999_v57 = vpack.c.bf16 %v597_v50, %v549_v44 }
 0x11a   : > { %v2137_v58 = vunpack.i.h.bf16 %v2135_v52  ;;  %v2136_v59 = vunpack.i.l.bf16 %v2135_v52 }
 0x11b   : > { %1998 = vmatprep.subr.bf16.mxu0 %v1997_v55 }
 0x11c   : > { %2000 = vmatpush1.bf16.msra.mxu0 %v1999_v57  ;;  %v674_v63 = vsel %vm672_vm4, %v2136_v59, %v2137_v58  ;;  %v673_v4 = vsel %vm672_vm4, %v667_v22, %v2136_v59  ;;  %v787_v59 = vld [vmem:[%s3041_s2] sm:$0xff] }
 0x11d   : > { %v698_v5 = vpop.permute.xlu1 %697  ;;  %v2140_v6 = vpop.permute.xlu0 %2139  ;;  %v2001_v8 = vpack.c.bf16 %v674_v63, %v646_v61  ;;  %v2003_v10 = vpack.c.bf16 %v673_v4, %v645_v0 }
 0x11e   : > { %v2142_v17 = vunpack.i.h.bf16 %v2140_v6  ;;  %v2141_v18 = vunpack.i.l.bf16 %v2140_v6 }
 0x11f   : > { %2002 = vmatprep.subr.bf16.mxu0 %v2001_v8 }
 0x120   : > { %2004 = vmatpush1.bf16.msra.mxu0 %v2003_v10  ;;  %v704_v19 = vsel %vm655_vm3, %v2141_v18, %v2142_v17  ;;  %v703_v20 = vsel %vm655_vm3, %v698_v5, %v2141_v18 }
 0x121   : > { %v2150_v21 = vpop.permute.xlu1 %2149  ;;  %v2145_v22 = vpop.permute.xlu0 %2144  ;;  %v2005_v23 = vpack.c.bf16 %v704_v19, %v680_v12  ;;  %v2007_v32 = vpack.c.bf16 %v703_v20, %v679_v14 }
 0x122   : > { %v2152_v35 = vunpack.i.h.bf16 %v2150_v21  ;;  %v2151_v36 = vunpack.i.l.bf16 %v2150_v21  ;;  %v2147_v39 = vunpack.i.h.bf16 %v2145_v22  ;;  %v2146_v40 = vunpack.i.l.bf16 %v2145_v22 }
 0x123   : > { %2006 = vmatprep.subr.bf16.mxu0 %v2005_v23 }
 0x124   : > { %2008 = vmatpush1.bf16.msra.mxu0 %v2007_v32  ;;  %v730_v41 = vsel %vm627_vm2, %v2146_v40, %v2147_v39  ;;  %v756_v42 = vsel %vm579_vm1, %v2151_v36, %v2152_v35  ;;  %v729_v49 = vsel %vm627_vm2, %v724_v53, %v2146_v40 }
 0x125   : > { %v750_v44 = vpop.permute.xlu1 %749  ;;  %v778_v45 = vpop.permute.xlu0 %777  ;;  %v2009_v47 = vpack.c.bf16 %v756_v42, %v730_v41 }
 0x126   : > { %v755_v50 = vsel %vm579_vm1, %v750_v44, %v2151_v36 }
 0x127   : > { %v2011_v52 = vpack.c.bf16 %v755_v50, %v729_v49  ;;  %2010 = vmatprep.subr.bf16.mxu0 %v2009_v47 }
 0x129   : > { %v780_v55 = vpop.permute.xlu1 %779  ;;  %v776_v57 = vpop.permute.xlu0 %775  ;;  %2012 = vmatpush1.bf16.msra.mxu0 %v2011_v52  ;;  %v1062_v52 = vld [vmem:[%s2994_s5] sm:$0xff] }
 0x12a   : > { %v782_v58 = vsel %vm531_vm0, %v778_v45, %v780_v55  ;;  %v781_v61 = vsel %vm531_vm0, %v776_v57, %v778_v45  ;;  %v1143_v57 = vld [vmem:[%s2996_s7] sm:$0xff] }
 0x12b   : > { %832 = vmatprep.subr.mxu0 %v782_v58 }
 0x12d   : > { %833 = vmatpush1.msra.mxu0 %v781_v61  ;;  %v902_v58 = vpop.permute.xlu0 %901 }
 0x12e   : > { %1983 = vmatmul.mubr.msk.f32.vlgmr.msra.gmra.mrb[0].mxu0 %vm812_vm8, %v787_v59 }
 0x12f   : > { %1474 = vmatprep.mubr.f32.mxu0 %v2333_v9 }
 0x131   : > { %v938_v61 = vpop.permute.xlu0 %937 }
 0x13a   : > { %v810_v53 = vpop.permute.xlu1 %809 }
 0x13e   : > { %v920_v59 = vpop.permute.xlu1 %919 }
 0x201   : > { %v882_v63 = vpop.f32.mrb[0].mxu0 }
 0x202   : > { %v883_v0 = vadd.f32 %v882_v63, %v810_v53  ;;  %v884_v4 = vpop.f32.mrb[1].mxu0 }
 0x203   : > { %v885_v5 = vadd.f32 %v884_v4, %v810_v53  ;;  %v956_v53 = vpop.permute.xlu1 %955 }
 0x204   : > { %v2658_v6 = vmax.f32 %v883_v0, 0.0 }
 0x205   : > { %v2660_v8 = vmax.f32 %v885_v5, 0.0 }
 0x206   : > { %v914_v10 = vmul.f32 %v2658_v6, %v2519_v33  ;;  %v896_v12 = vmul.f32 %v2658_v6, %v2509_v28  ;;  %v950_v14 = vmul.f32 %v2658_v6, %v2547_v46  ;;  %v932_v17 = vmul.f32 %v2658_v6, %v2529_v37 }
 0x207   : > { %v915_v18 = vmul.f32 %v2660_v8, %v2503_v26  ;;  %v897_v19 = vmul.f32 %v2660_v8, %v2505_v27  ;;  %v951_v20 = vmul.f32 %v2660_v8, %v2533_v38  ;;  %v933_v21 = vmul.f32 %v2660_v8, %v2515_v31 }
 0x208   : > { %v971_v36 = vmul.f32 %v2658_v6, %v2552_v48  ;;  %v989_v39 = vmul.f32 %v2658_v6, %v2566_v56  ;;  %v1008_v40 = vmul.f32 %v2660_v8, %v2589_v3  ;;  %v972_v41 = vmul.f32 %v2660_v8, %v2558_v51 }
 0x209   : > { %v2159_v22 = vpack.i.bf16 %v915_v18, %v914_v10  ;;  %v2154_v23 = vpack.i.bf16 %v897_v19, %v896_v12  ;;  %v2169_v32 = vpack.i.bf16 %v951_v20, %v950_v14  ;;  %v2164_v35 = vpack.i.bf16 %v933_v21, %v932_v17 }
 0x20a   : > { %v2184_v42 = vpack.i.bf16 %v2585_v2, %v1008_v40  ;;  %v2174_v44 = vpack.i.bf16 %v2564_v54, %v972_v41  ;;  %v990_v45 = vmul.f32 %v2660_v8, %v2574_v60  ;;  %v1007_v47 = vmul.f32 %v2658_v6, %v2578_v62 }
 0x20b   : > { %2160 = vrot.lane.b32.xlu1 %v2159_v22, %s3040_s20  ;;  %2155 = vrot.lane.b32.xlu0 %v2154_v23, %s3039_s27  ;;  %v1026_v50 = vmul.f32 %v2660_v8, %v2605_v11  ;;  %v1025_v55 = vmul.f32 %v2658_v6, %v2597_v7 }
 0x20c   : > { %v2179_v49 = vpack.i.bf16 %v2583_v1, %v990_v45 }
 0x20f   : > { %2170 = vrot.lane.b32.xlu1 %v2169_v32, %s3033_s25  ;;  %2165 = vrot.lane.b32.xlu0 %v2164_v35, %s3032_s1 }
 0x213   : > { %977 = vrot.lane.b32.xlu1 %v971_v36, %s3035_s30  ;;  %995 = vrot.lane.b32.xlu0 %v989_v39, %s3034_s26 }
 0x217   : > { %2185 = vrot.lane.b32.xlu1 %v2184_v42, %s3036_s16  ;;  %2175 = vrot.lane.b32.xlu0 %v2174_v44, %s3035_s30 }
 0x21b   : > { %1013 = vrot.lane.b32.xlu1 %v1007_v47, %s3036_s16  ;;  %2180 = vrot.lane.b32.xlu0 %v2179_v49, %s3034_s26 }
 0x21f   : > { %1035 = vrot.lane.b32.xlu1 %v2615_v15, %s3037_s23  ;;  %1033 = vrot.lane.b32.xlu0 %v1026_v50, %s3037_s23 }
 0x223   : > { %1065 = vperm.xlu1 %2153, %v1062_v52   ;;  %1031 = vrot.lane.b32.xlu0 %v1025_v55, %s3037_s23 }
 0x227   : > { %1258 = vrot.lane.b32.xlu1 %v2492_v24, %s3040_s20  ;;  %1146 = vperm.xlu0 %2189, %v1143_v57  }
 0x22b   : > { %1294 = vrot.lane.b32.xlu1 %v2541_v43, %s3033_s25  ;;  %1240 = vrot.lane.b32.xlu0 %v2494_v25, %s3039_s27 }
 0x22f   : > { %1276 = vrot.lane.b32.xlu0 %v2521_v34, %s3032_s1 }
 0x27d   : > { %v2161_v63 = vpop.permute.xlu1 %2160  ;;  %v2156_v0 = vpop.permute.xlu0 %2155 }
 0x27e   : > { %v2163_v4 = vunpack.i.h.bf16 %v2161_v63  ;;  %v2162_v5 = vunpack.i.l.bf16 %v2161_v63  ;;  %v2158_v10 = vunpack.i.h.bf16 %v2156_v0  ;;  %v2157_v12 = vunpack.i.l.bf16 %v2156_v0 }
 0x27f   : > { %v967_v63 = vmul.f32 %v2658_v6, %v2466_v13 }
 0x280   : > { %v908_v14 = vsel %vm548_vm7, %v2157_v12, %v2158_v10  ;;  %v926_v17 = vsel %vm596_vm6, %v2162_v5, %v2163_v4  ;;  %v907_v18 = vsel %vm548_vm7, %v902_v58, %v2157_v12  ;;  %v925_v19 = vsel %vm596_vm6, %v920_v59, %v2162_v5 }
 0x281   : > { %v2171_v20 = vpop.permute.xlu1 %2170  ;;  %v2166_v21 = vpop.permute.xlu0 %2165  ;;  %v2013_v22 = vpack.c.bf16 %v926_v17, %v908_v14  ;;  %v2015_v23 = vpack.c.bf16 %v925_v19, %v907_v18  ;;  %v968_v59 = vmul.f32 %v2660_v8, %v2471_v16 }
 0x282   : > { %v2173_v32 = vunpack.i.h.bf16 %v2171_v20  ;;  %v2172_v35 = vunpack.i.l.bf16 %v2171_v20  ;;  %v2168_v36 = vunpack.i.h.bf16 %v2166_v21  ;;  %v2167_v39 = vunpack.i.l.bf16 %v2166_v21 }
 0x283   : > { %2014 = vmatprep.subr.bf16.mxu1 %v2013_v22 }
 0x284   : > { %2016 = vmatpush1.bf16.msra.mxu1 %v2015_v23  ;;  %v944_v40 = vsel %vm644_vm5, %v2167_v39, %v2168_v36  ;;  %v962_v41 = vsel %vm672_vm4, %v2172_v35, %v2173_v32  ;;  %v943_v42 = vsel %vm644_vm5, %v938_v61, %v2167_v39  ;;  %v961_v44 = vsel %vm672_vm4, %v956_v53, %v2172_v35 }
 0x285   : > { %v978_v45 = vpop.permute.xlu1 %977  ;;  %v996_v47 = vpop.permute.xlu0 %995  ;;  %v2017_v49 = vpack.c.bf16 %v962_v41, %v944_v40  ;;  %v2019_v50 = vpack.c.bf16 %v961_v44, %v943_v42  ;;  %v1043_v40 = vld [vmem:[%s2993_s4] sm:$0xff] }
 0x286   : > { %v1142_v41 = vld [vmem:[%s2995_s6] sm:$0xff] }
 0x287   : > { %2018 = vmatprep.subr.bf16.mxu1 %v2017_v49 }
 0x288   : > { %2020 = vmatpush1.bf16.msra.mxu1 %v2019_v50 }
 0x289   : > { %v2186_v52 = vpop.permute.xlu1 %2185  ;;  %v2176_v55 = vpop.permute.xlu0 %2175 }
 0x28a   : > { %v2178_v57 = vunpack.i.h.bf16 %v2176_v55  ;;  %v2177_v58 = vunpack.i.l.bf16 %v2176_v55  ;;  %v2188_v0 = vunpack.i.h.bf16 %v2186_v52  ;;  %v2187_v61 = vunpack.i.l.bf16 %v2186_v52 }
 0x28c   : > { %v984_v53 = vsel %vm655_vm3, %v2177_v58, %v2178_v57  ;;  %v983_v4 = vsel %vm655_vm3, %v978_v45, %v2177_v58  ;;  %v1020_v6 = vsel %vm579_vm1, %v2187_v61, %v2188_v0 }
 0x28d   : > { %v1014_v5 = vpop.permute.xlu1 %1013  ;;  %v2181_v10 = vpop.permute.xlu0 %2180  ;;  %v2021_v12 = vpack.c.bf16 %v984_v53, %v968_v59  ;;  %v2023_v14 = vpack.c.bf16 %v983_v4, %v967_v63 }
 0x28e   : > { %v2183_v17 = vunpack.i.h.bf16 %v2181_v10  ;;  %v2182_v18 = vunpack.i.l.bf16 %v2181_v10  ;;  %v1019_v19 = vsel %vm579_vm1, %v1014_v5, %v2187_v61 }
 0x28f   : > { %2022 = vmatprep.subr.bf16.mxu1 %v2021_v12 }
 0x290   : > { %2024 = vmatpush1.bf16.msra.mxu1 %v2023_v14  ;;  %v1002_v8 = vsel %vm627_vm2, %v2182_v18, %v2183_v17  ;;  %v1001_v20 = vsel %vm627_vm2, %v996_v47, %v2182_v18 }
 0x291   : > { %v1036_v21 = vpop.permute.xlu1 %1035  ;;  %v1034_v22 = vpop.permute.xlu0 %1033  ;;  %v2025_v23 = vpack.c.bf16 %v1020_v6, %v1002_v8  ;;  %v2027_v32 = vpack.c.bf16 %v1019_v19, %v1001_v20 }
 0x292   : > { %v1038_v35 = vsel %vm531_vm0, %v1034_v22, %v1036_v21 }
 0x293   : > { %2026 = vmatprep.subr.bf16.mxu1 %v2025_v23 }
 0x294   : > { %2028 = vmatpush1.bf16.msra.mxu1 %v2027_v32 }
 0x295   : > { %v1032_v36 = vpop.permute.xlu0 %1031  ;;  %1087 = vmatprep.subr.mxu1 %v1038_v35  ;;  %v1401_v35 = vld [vmem:[%s2998_s9] sm:$0xff] }
 0x296   : > { %v1037_v39 = vsel %vm531_vm0, %v1032_v36, %v1034_v22 }
 0x298   : > { %1088 = vmatpush1.msra.mxu1 %v1037_v39 }
 0x299   : > { %1984 = vmatmul.mubr.msk.f32.vlgmr.msra.gmra.mrb[0].mxu1 %vm812_vm8, %v1043_v40  ;;  %1153 = vmatprep.subr.mxu1 %v2513_v30 }
 0x29a   : > { %1154 = vmatpush1.msra.mxu1 %v2511_v29  ;;  %1217 = vmatprep.mubr.f32.mxu1 %v2333_v9 }
 0x2a1   : > { %1985 = vmatmul.mubr.msk.f32.vlgmr.msra.gmra.mrb[0].mxu1 %vm1149_vm9, %v1142_v41 }
 0x2a2   : > { %1729 = vmatprep.mubr.f32.mxu1 %v2333_v9  ;;  %v1066_v44 = vpop.permute.xlu1 %1065 }
 0x2a6   : > { %v1147_v42 = vpop.permute.xlu0 %1146  ;;  %v1259_v36 = vpop.permute.xlu1 %1258 }
 0x2a7   : > { %v2061_v45 = vadd.f32 %v1147_v42, %v1066_v44 }
 0x2aa   : > { %v1241_v39 = vpop.permute.xlu0 %1240 }
 0x2ae   : > { %v1277_v40 = vpop.permute.xlu0 %1276 }
 0x374   : > { %v1219_v47 = vpop.f32.mrb[0].mxu1 }
 0x375   : > { %v2062_v49 = vadd.f32 %v2061_v45, %v1219_v47  ;;  %v1221_v50 = vpop.f32.mrb[1].mxu1 }
 0x376   : > { %v2064_v30 = vadd.f32 %v2061_v45, %v1221_v50 }
 0x377   : > { %v2757_v52 = vmax.f32 %v2062_v49, 0.0 }
 0x378   : > { %v2759_v29 = vmax.f32 %v2064_v30, 0.0 }
 0x379   : > { %v1271_v55 = vmul.f32 %v2757_v52, %v2529_v37  ;;  %v1235_v57 = vmul.f32 %v2757_v52, %v2509_v28  ;;  %v1253_v61 = vmul.f32 %v2757_v52, %v2519_v33  ;;  %v1328_v4 = vmul.f32 %v2757_v52, %v2566_v56 }
 0x37a   : > { %v1272_v58 = vmul.f32 %v2759_v29, %v2515_v31  ;;  %v1236_v59 = vmul.f32 %v2759_v29, %v2505_v27  ;;  %v1254_v53 = vmul.f32 %v2759_v29, %v2503_v26  ;;  %v1311_v10 = vmul.f32 %v2759_v29, %v2558_v51 }
 0x37b   : > { %v1289_v12 = vmul.f32 %v2757_v52, %v2547_v46  ;;  %v1290_v14 = vmul.f32 %v2759_v29, %v2533_v38  ;;  %v1329_v19 = vmul.f32 %v2759_v29, %v2574_v60  ;;  %v1310_v6 = vmul.f32 %v2757_v52, %v2552_v48 }
 0x37c   : > { %v2200_v63 = vpack.i.bf16 %v1272_v58, %v1271_v55  ;;  %v2190_v0 = vpack.i.bf16 %v1236_v59, %v1235_v57  ;;  %v2195_v5 = vpack.i.bf16 %v1254_v53, %v1253_v61  ;;  %v2210_v17 = vpack.i.bf16 %v2564_v54, %v1311_v10 }
 0x37d   : > { %v2205_v18 = vpack.i.bf16 %v1290_v14, %v1289_v12  ;;  %v2215_v8 = vpack.i.bf16 %v2583_v1, %v1329_v19  ;;  %v1347_v20 = vmul.f32 %v2759_v29, %v2589_v3  ;;  %v1365_v21 = vmul.f32 %v2759_v29, %v2605_v11 }
 0x37e   : > { %2201 = vrot.lane.b32.xlu0 %v2200_v63, %s3032_s1  ;;  %2191 = vrot.lane.b32.xlu1 %v2190_v0, %s3039_s27  ;;  %v1364_v23 = vmul.f32 %v2757_v52, %v2597_v7  ;;  %v1346_v32 = vmul.f32 %v2757_v52, %v2578_v62 }
 0x37f   : > { %v2220_v22 = vpack.i.bf16 %v2585_v2, %v1347_v20 }
 0x382   : > { %1334 = vrot.lane.b32.xlu0 %v1328_v4, %s3034_s26  ;;  %2196 = vrot.lane.b32.xlu1 %v2195_v5, %s3040_s20 }
 0x386   : > { %2211 = vrot.lane.b32.xlu0 %v2210_v17, %s3035_s30  ;;  %2206 = vrot.lane.b32.xlu1 %v2205_v18, %s3033_s25 }
 0x38a   : > { %2216 = vrot.lane.b32.xlu0 %v2215_v8, %s3034_s26  ;;  %1316 = vrot.lane.b32.xlu1 %v1310_v6, %s3035_s30 }
 0x38e   : > { %1372 = vrot.lane.b32.xlu0 %v1365_v21, %s3037_s23  ;;  %2221 = vrot.lane.b32.xlu1 %v2220_v22, %s3036_s16  ;;  %v1307_v22 = vmul.f32 %v2759_v29, %v2471_v16 }
 0x392   : > { %1370 = vrot.lane.b32.xlu0 %v1364_v23, %s3037_s23  ;;  %1352 = vrot.lane.b32.xlu1 %v1346_v32, %s3036_s16 }
 0x396   : > { %1495 = vrot.lane.b32.xlu0 %v2494_v25, %s3039_s27  ;;  %1374 = vrot.lane.b32.xlu1 %v2615_v15, %s3037_s23  ;;  %v1295_v25 = vpop.permute.xlu1 %1294 }
 0x39a   : > { %1531 = vrot.lane.b32.xlu0 %v2521_v34, %s3032_s1  ;;  %1404 = vperm.xlu1 %2153, %v1401_v35  }
 0x39e   : > { %1513 = vrot.lane.b32.xlu1 %v2492_v24, %s3040_s20 }
 0x3a2   : > { %1549 = vrot.lane.b32.xlu1 %v2541_v43, %s3033_s25 }
 0x3f0   : > { %v2202_v41 = vpop.permute.xlu0 %2201  ;;  %v2192_v42 = vpop.permute.xlu1 %2191 }
 0x3f1   : > { %v2194_v44 = vunpack.i.h.bf16 %v2192_v42  ;;  %v2193_v45 = vunpack.i.l.bf16 %v2192_v42  ;;  %v2204_v34 = vunpack.i.h.bf16 %v2202_v41  ;;  %v2203_v55 = vunpack.i.l.bf16 %v2202_v41 }
 0x3f3   : > { %v1246_v57 = vsel %vm548_vm7, %v1241_v39, %v2193_v45  ;;  %v1247_v43 = vsel %vm548_vm7, %v2193_v45, %v2194_v44  ;;  %v1282_v12 = vsel %vm644_vm5, %v1277_v40, %v2203_v55  ;;  %v1283_v17 = vsel %vm644_vm5, %v2203_v55, %v2204_v34 }
 0x3f4   : > { %v1335_v47 = vpop.permute.xlu0 %1334  ;;  %v2197_v49 = vpop.permute.xlu1 %2196  ;;  %v1306_v39 = vmul.f32 %v2757_v52, %v2466_v13 }
 0x3f5   : > { %v2199_v50 = vunpack.i.h.bf16 %v2197_v49  ;;  %v2198_v30 = vunpack.i.l.bf16 %v2197_v49 }
 0x3f7   : > { %v1264_v24 = vsel %vm596_vm6, %v1259_v36, %v2198_v30  ;;  %v1265_v58 = vsel %vm596_vm6, %v2198_v30, %v2199_v50 }
 0x3f8   : > { %v2031_v59 = vpack.c.bf16 %v1264_v24, %v1246_v57  ;;  %v2212_v63 = vpop.permute.xlu0 %2211  ;;  %v2207_v0 = vpop.permute.xlu1 %2206  ;;  %v2029_v61 = vpack.c.bf16 %v1265_v58, %v1247_v43 }
 0x3f9   : > { %v2214_v53 = vunpack.i.h.bf16 %v2212_v63  ;;  %v2213_v4 = vunpack.i.l.bf16 %v2212_v63  ;;  %v2209_v5 = vunpack.i.h.bf16 %v2207_v0  ;;  %v2208_v10 = vunpack.i.l.bf16 %v2207_v0 }
 0x3fa   : > { %2030 = vmatprep.subr.bf16.mxu0 %v2029_v61 }
 0x3fb   : > { %v1300_v14 = vsel %vm672_vm4, %v1295_v25, %v2208_v10  ;;  %2032 = vmatpush1.bf16.msra.mxu0 %v2031_v59  ;;  %v1301_v18 = vsel %vm672_vm4, %v2208_v10, %v2209_v5  ;;  %v1323_v19 = vsel %vm655_vm3, %v2213_v4, %v2214_v53  ;;  %v1382_v59 = vld [vmem:[%s2997_s8] sm:$0xff] }
 0x3fc   : > { %v2035_v8 = vpack.c.bf16 %v1300_v14, %v1282_v12  ;;  %v2217_v6 = vpop.permute.xlu0 %2216  ;;  %v1317_v20 = vpop.permute.xlu1 %1316  ;;  %v2033_v21 = vpack.c.bf16 %v1301_v18, %v1283_v17  ;;  %v2037_v32 = vpack.c.bf16 %v1323_v19, %v1307_v22 }
 0x3fd   : > { %v1322_v23 = vsel %vm655_vm3, %v1317_v20, %v2213_v4  ;;  %v2219_v35 = vunpack.i.h.bf16 %v2217_v6  ;;  %v2218_v36 = vunpack.i.l.bf16 %v2217_v6 }
 0x3fe   : > { %2034 = vmatprep.subr.bf16.mxu0 %v2033_v21  ;;  %v2039_v40 = vpack.c.bf16 %v1322_v23, %v1306_v39 }
 0x3ff   : > { %2036 = vmatpush1.bf16.msra.mxu0 %v2035_v8  ;;  %v1341_v45 = vsel %vm627_vm2, %v2218_v36, %v2219_v35  ;;  %v1340_v34 = vsel %vm627_vm2, %v1335_v47, %v2218_v36 }
 0x400   : > { %v2222_v25 = vpop.permute.xlu1 %2221  ;;  %2038 = vmatprep.subr.bf16.mxu0 %v2037_v32  ;;  %v1373_v44 = vpop.permute.xlu0 %1372 }
 0x401   : > { %v2224_v41 = vunpack.i.h.bf16 %v2222_v25  ;;  %v2223_v42 = vunpack.i.l.bf16 %v2222_v25 }
 0x403   : > { %2040 = vmatpush1.bf16.msra.mxu0 %v2039_v40  ;;  %v1359_v49 = vsel %vm579_vm1, %v2223_v42, %v2224_v41 }
 0x404   : > { %v1353_v50 = vpop.permute.xlu1 %1352  ;;  %v2041_v30 = vpack.c.bf16 %v1359_v49, %v1341_v45  ;;  %v1371_v24 = vpop.permute.xlu0 %1370 }
 0x405   : > { %v1358_v55 = vsel %vm579_vm1, %v1353_v50, %v2223_v42  ;;  %v1376_v63 = vsel %vm531_vm0, %v1371_v24, %v1373_v44 }
 0x406   : > { %v2043_v57 = vpack.c.bf16 %v1358_v55, %v1340_v34  ;;  %2042 = vmatprep.subr.bf16.mxu0 %v2041_v30 }
 0x408   : > { %v1375_v43 = vpop.permute.xlu1 %1374  ;;  %2044 = vmatpush1.bf16.msra.mxu0 %v2043_v57 }
 0x409   : > { %v1377_v58 = vsel %vm531_vm0, %v1373_v44, %v1375_v43 }
 0x40a   : > { %1426 = vmatprep.subr.mxu0 %v1377_v58 }
 0x40c   : > { %1427 = vmatpush1.msra.mxu0 %v1376_v63 }
 0x40d   : > { %1986 = vmatmul.mubr.msk.f32.vlgmr.msra.gmra.mrb[2].mxu0 %vm812_vm8, %v1382_v59 }
 0x40e   : > { %1809 = vmatprep.mubr.f32.mxu0 %v2333_v9 }
 0x419   : > { %v1405_v47 = vpop.permute.xlu1 %1404 }
 0x4e0   : > { %v1476_v0 = vpop.f32.mrb[2].mxu0 }
 0x4e1   : > { %v1477_v61 = vadd.f32 %v1476_v0, %v1405_v47  ;;  %v1478_v53 = vpop.f32.mrb[3].mxu0 }
 0x4e2   : > { %v1479_v4 = vadd.f32 %v1478_v53, %v1405_v47 }
 0x4e3   : > { %v2846_v5 = vmax.f32 %v1477_v61, 0.0 }
 0x4e4   : > { %v2848_v10 = vmax.f32 %v1479_v4, 0.0 }
 0x4e5   : > { %v1508_v12 = vmul.f32 %v2846_v5, %v2519_v33  ;;  %v1490_v14 = vmul.f32 %v2846_v5, %v2509_v28  ;;  %v1544_v17 = vmul.f32 %v2846_v5, %v2547_v46  ;;  %v1526_v18 = vmul.f32 %v2846_v5, %v2529_v37 }
 0x4e6   : > { %v1509_v19 = vmul.f32 %v2848_v10, %v2503_v26  ;;  %v1491_v8 = vmul.f32 %v2848_v10, %v2505_v27  ;;  %v1545_v6 = vmul.f32 %v2848_v10, %v2533_v38  ;;  %v1527_v33 = vmul.f32 %v2848_v10, %v2515_v31 }
 0x4e7   : > { %v1565_v26 = vmul.f32 %v2846_v5, %v2552_v48  ;;  %v1583_v27 = vmul.f32 %v2846_v5, %v2566_v56  ;;  %v1602_v31 = vmul.f32 %v2848_v10, %v2589_v3  ;;  %v1566_v37 = vmul.f32 %v2848_v10, %v2558_v51  ;;  %v1514_v3 = vpop.permute.xlu1 %1513 }
 0x4e8   : > { %v2230_v20 = vpack.i.bf16 %v1509_v19, %v1508_v12  ;;  %v2225_v28 = vpack.i.bf16 %v1491_v8, %v1490_v14  ;;  %v2240_v21 = vpack.i.bf16 %v1545_v6, %v1544_v17  ;;  %v2235_v22 = vpack.i.bf16 %v1527_v33, %v1526_v18 }
 0x4e9   : > { %v2255_v38 = vpack.i.bf16 %v2585_v2, %v1602_v31  ;;  %v2245_v46 = vpack.i.bf16 %v2564_v54, %v1566_v37  ;;  %v1584_v48 = vmul.f32 %v2848_v10, %v2574_v60  ;;  %v1601_v56 = vmul.f32 %v2846_v5, %v2578_v62  ;;  %v1656_v54 = vld [vmem:[%s3000_s11] sm:$0xff] }
 0x4ea   : > { %2231 = vrot.lane.b32.xlu1 %v2230_v20, %s3040_s20  ;;  %2226 = vrot.lane.b32.xlu0 %v2225_v28, %s3039_s27  ;;  %v1620_v2 = vmul.f32 %v2848_v10, %v2605_v11  ;;  %v1619_v60 = vmul.f32 %v2846_v5, %v2597_v7  ;;  %v1890_v62 = vld [vmem:[%s3003_s14] sm:$0xff]  ;;  %v1561_v17 = vmul.f32 %v2846_v5, %v2466_v13  ;;  %s1996_s20 = sshll.u32 %s2436_s22, 8  ;;  %s487_s27 = scalar_lea.vmem [#allocation4], %s1980_s17 }
 0x4eb   : > { %v2250_v51 = vpack.i.bf16 %v2583_v1, %v1584_v48  ;;  %v1496_v1 = vpop.permute.xlu0 %1495  ;;  %v1562_v18 = vmul.f32 %v2848_v10, %v2471_v16  ;;  %s2334_s22 = smov [#allocation4]  }
 0x4ec   : > { %s2264_s2 = sshll.u32 %s2334_s22, 4  ;;  %s2265_s2 = int_to_ptr.vmem [resolvable:$false] %s2264_s2 }
 0x4ed   : > { %s2266_s3 = scalar_lea.vmem %s2265_s2, 512 }
 0x4ee   : > { %2241 = vrot.lane.b32.xlu1 %v2240_v21, %s3033_s25  ;;  %2236 = vrot.lane.b32.xlu0 %v2235_v22, %s3032_s1  ;;  %s1917_s1 = sshll.u32 %s487_s27, 4  ;;  %s2949_s1 = int_to_ptr.vmem [resolvable:$true] %s1917_s1 }
 0x4ef   : > { %v1532_v11 = vpop.permute.xlu0 %1531  ;;  %p2267_p0 = scmp.lt.s32.totalorder %s2949_s1, %s2265_s2 }
 0x4f2   : > { %1571 = vrot.lane.b32.xlu1 %v1565_v26, %s3035_s30  ;;  %1589 = vrot.lane.b32.xlu0 %v1583_v27, %s3034_s26 }
 0x4f6   : > { %2256 = vrot.lane.b32.xlu1 %v2255_v38, %s3036_s16  ;;  %2246 = vrot.lane.b32.xlu0 %v2245_v46, %s3035_s30  ;;  %s1903_s30 = scalar_lea.sflag [#allocation5], %s485_s0 }
 0x4fa   : > { %1607 = vrot.lane.b32.xlu1 %v1601_v56, %s3036_s16  ;;  %2251 = vrot.lane.b32.xlu0 %v2250_v51, %s3034_s26  ;;  %s2947_s26 = scalar_lea.hbm %s3004_s15, %s1996_s20  ;;  %s2260_s16 = scalar_lea.vmem %s2949_s1, 256 }
 0x4fb   : > { %p2261_p11 = scmp.ne.s32.totalorder %s2949_s1, %s2260_s16  ;;  %p2268_p1 = scmp.lt.s32.totalorder %s2266_s3, %s2260_s16 }
 0x4fd   : > { %p2262_p12 = pnand %p2261_p11, %p2453_p5  ;;  %p2269_p2 = por %p2268_p1, %p2267_p0 }
 0x4fe   : > { %1629 = vrot.lane.b32.xlu1 %v2615_v15, %s3037_s23  ;;  %1627 = vrot.lane.b32.xlu0 %v1620_v2, %s3037_s23  ;;  %v1550_v15 = vpop.permute.xlu1 %1549  ;;  %v1637_v2 = vld [vmem:[%s2999_s10] sm:$0xff] }
 0x4ff   : > { %p2263_p13 = pneg %p2262_p12 }
 0x501   : > { %p2270_p3 = pnand %p2269_p2, %p2263_p13 }
 0x502   : > { %1659 = vperm.xlu1 %2153, %v1656_v54   ;;  %1625 = vrot.lane.b32.xlu0 %v1619_v60, %s3037_s23 }
 0x506   : > { %1893 = vperm.xlu0 %2189, %v1890_v62  }
 0x55c   : > { %v2232_v23 = vpop.permute.xlu1 %2231  ;;  %v2227_v32 = vpop.permute.xlu0 %2226 }
 0x55d   : > { %v2234_v35 = vunpack.i.h.bf16 %v2232_v23  ;;  %v2233_v36 = vunpack.i.l.bf16 %v2232_v23  ;;  %v2229_v39 = vunpack.i.h.bf16 %v2227_v32  ;;  %v2228_v25 = vunpack.i.l.bf16 %v2227_v32 }
 0x55f   : > { %v1519_v7 = vsel %vm596_vm6, %v1514_v3, %v2233_v36  ;;  %v1501_v40 = vsel %vm548_vm7, %v1496_v1, %v2228_v25  ;;  %v1502_v41 = vsel %vm548_vm7, %v2228_v25, %v2229_v39  ;;  %v1520_v42 = vsel %vm596_vm6, %v2233_v36, %v2234_v35  ;;  %v1741_v35 = vld [vmem:[%s3002_s13] sm:$0xff] }
 0x560   : > { %v2047_v44 = vpack.c.bf16 %v1519_v7, %v1501_v40  ;;  %v2242_v45 = vpop.permute.xlu1 %2241  ;;  %v2237_v49 = vpop.permute.xlu0 %2236  ;;  %v2045_v50 = vpack.c.bf16 %v1520_v42, %v1502_v41  ;;  %v1740_v36 = vld [vmem:[%s3001_s12] sm:$0xff] }
 0x561   : > { %v2244_v30 = vunpack.i.h.bf16 %v2242_v45  ;;  %v2243_v34 = vunpack.i.l.bf16 %v2242_v45  ;;  %v2239_v55 = vunpack.i.h.bf16 %v2237_v49  ;;  %v2238_v57 = vunpack.i.l.bf16 %v2237_v49 }
 0x562   : > { %2046 = vmatprep.subr.bf16.mxu1 %v2045_v50 }
 0x563   : > { %v1555_v24 = vsel %vm672_vm4, %v1550_v15, %v2243_v34  ;;  %v1537_v43 = vsel %vm644_vm5, %v1532_v11, %v2238_v57  ;;  %2048 = vmatpush1.bf16.msra.mxu1 %v2047_v44  ;;  %v1538_v58 = vsel %vm644_vm5, %v2238_v57, %v2239_v55  ;;  %v1556_v59 = vsel %vm672_vm4, %v2243_v34, %v2244_v30 }
 0x564   : > { %v2051_v63 = vpack.c.bf16 %v1555_v24, %v1537_v43  ;;  %v1572_v47 = vpop.permute.xlu1 %1571  ;;  %v1590_v0 = vpop.permute.xlu0 %1589  ;;  %v2049_v61 = vpack.c.bf16 %v1556_v59, %v1538_v58 }
 0x566   : > { %2050 = vmatprep.subr.bf16.mxu1 %v2049_v61 }
 0x567   : > { %2052 = vmatpush1.bf16.msra.mxu1 %v2051_v63 }
 0x568   : > { %v2257_v53 = vpop.permute.xlu1 %2256  ;;  %v2247_v4 = vpop.permute.xlu0 %2246 }
 0x569   : > { %v2249_v12 = vunpack.i.h.bf16 %v2247_v4  ;;  %v2248_v14 = vunpack.i.l.bf16 %v2247_v4  ;;  %v2259_v19 = vunpack.i.h.bf16 %v2257_v53  ;;  %v2258_v8 = vunpack.i.l.bf16 %v2257_v53 }
 0x56b   : > { %v1577_v6 = vsel %vm655_vm3, %v1572_v47, %v2248_v14  ;;  %v1578_v33 = vsel %vm655_vm3, %v2248_v14, %v2249_v12  ;;  %v1614_v5 = vsel %vm579_vm1, %v2258_v8, %v2259_v19 }
 0x56c   : > { %v2055_v20 = vpack.c.bf16 %v1577_v6, %v1561_v17  ;;  %v1608_v28 = vpop.permute.xlu1 %1607  ;;  %v2252_v21 = vpop.permute.xlu0 %2251  ;;  %v2053_v22 = vpack.c.bf16 %v1578_v33, %v1562_v18 }
 0x56d   : > { %v2254_v26 = vunpack.i.h.bf16 %v2252_v21  ;;  %v2253_v27 = vunpack.i.l.bf16 %v2252_v21  ;;  %v1613_v31 = vsel %vm579_vm1, %v1608_v28, %v2258_v8 }
 0x56e   : > { %2054 = vmatprep.subr.bf16.mxu1 %v2053_v22 }
 0x56f   : > { %v1595_v13 = vsel %vm627_vm2, %v1590_v0, %v2253_v27  ;;  %2056 = vmatpush1.bf16.msra.mxu1 %v2055_v20  ;;  %v1596_v16 = vsel %vm627_vm2, %v2253_v27, %v2254_v26 }
 0x570   : > { %v2059_v10 = vpack.c.bf16 %v1613_v31, %v1595_v13  ;;  %v1630_v37 = vpop.permute.xlu1 %1629  ;;  %v1628_v38 = vpop.permute.xlu0 %1627  ;;  %v2057_v46 = vpack.c.bf16 %v1614_v5, %v1596_v16 }
 0x571   : > { %v1632_v48 = vsel %vm531_vm0, %v1628_v38, %v1630_v37 }
 0x572   : > { %2058 = vmatprep.subr.bf16.mxu1 %v2057_v46 }
 0x573   : > { %2060 = vmatpush1.bf16.msra.mxu1 %v2059_v10 }
 0x574   : > { %v1626_v56 = vpop.permute.xlu0 %1625  ;;  %1681 = vmatprep.subr.mxu1 %v1632_v48 }
 0x575   : > { %v1631_v51 = vsel %vm531_vm0, %v1626_v56, %v1628_v38 }
 0x577   : > { %1682 = vmatpush1.msra.mxu1 %v1631_v51 }
 0x578   : > { %1987 = vmatmul.mubr.msk.f32.vlgmr.msra.gmra.mrb[2].mxu1 %vm812_vm8, %v1637_v2 }
 0x581   : > { %v1660_v54 = vpop.permute.xlu1 %1659 }
 0x585   : > { %v1894_v39 = vpop.permute.xlu0 %1893 }
 0x64b   : > { %v1731_v60 = vpop.f32.mrb[2].mxu1 }
 0x64c   : > { %v1732_v62 = vadd.f32 %v1731_v60, %v1660_v54  ;;  %v1733_v1 = vpop.f32.mrb[3].mxu1 }
 0x64d   : > { %v1734_v3 = vadd.f32 %v1733_v1, %v1660_v54 }
 0x64e   : > { %v1736_v11 = vadd.f32 %v1732_v62, %v2757_v52 }
 0x64f   : > { %v1737_v15 = vadd.f32 %v1734_v3, %v2759_v29 }
 0x650   : > { %v1738_v32 = vmax.f32 %v1736_v11, 0.0 }
 0x651   : > { %v1739_v23 = vmax.f32 %v1737_v15, 0.0 }
 0x653   : > { %1745 = vmatprep.subr.mxu0 %v1739_v23 }
 0x654   : > { %1746 = vmatpush1.msra.mxu0 %v1738_v32 }
 0x655   : > { %1988 = vmatmul.mubr.msk.f32.vlgmr.msra.gmra.mrb[4].mxu0 %vm1149_vm9, %v1741_v35  ;;  %1819 = vmatprep.subr.mxu0 %v2759_v29 }
 0x656   : > { %1820 = vmatpush1.msra.mxu0 %v2757_v52  ;;  %1883 = vmatprep.mubr.f32.mxu0 %v2333_v9 }
 0x65d   : > { %1989 = vmatmul.mubr.msk.f32.vlgmr.msra.gmra.mrb[4].mxu0 %vm1149_vm9, %v1740_v36 }
 0x730   : > { %v1885_v25 = vpop.f32.mrb[4].mxu0 }
 0x731   : > { %v1896_v7 = vadd.f32 %v1894_v39, %v1885_v25  ;;  %v1887_v40 = vpop.f32.mrb[5].mxu0 }
 0x732   : > { %v1897_v29 = vadd.f32 %v1894_v39, %v1887_v40 }
 0x733   : > { %v1898_v52 = vmax.f32 %v1896_v7, 0.0 }
 0x734   : > { %v1899_v41 = vmax.f32 %v1897_v29, 0.0 }
 0x735   : > { %1900 = vst [vmem:[%s487_s27] sm:$0xff] %v1898_v52 }
 0x736   : > { %1901 = vst [vmem:[%s487_s27 + $0x8] sm:$0xff] %v1899_v41 }
 0x737   : > { %2273 = shalt.err (!%p2270_p3)
}
 0x738   : > { %s2274_s0 = scalar_lea.hbm %s2947_s26, 256  ;;  %s2278_s27 = scalar_lea.hbm %s3004_s15, 512 }
 0x739   : > { %p2275_p4 = scmp.ne.s32.totalorder %s2947_s26, %s2274_s0  ;;  %p2279_p9 = scmp.lt.u32.totalorder %s2947_s26, %s3004_s15 }
 0x73a   : > { %p2280_p10 = scmp.lt.u32.totalorder %s2278_s27, %s2274_s0  ;;  %p2282_p12 = scmp.lt.u32.totalorder %s2274_s0, %s2947_s26 }
 0x73b   : > { %p2276_p7 = pnand %p2275_p4, %p2453_p5 }
 0x73c   : > { %p2281_p11 = por %p2280_p10, %p2279_p9 }
 0x73d   : > { %p2277_p8 = pneg %p2276_p7 }
 0x73e   : > { %p2283_p13 = por %p2282_p12, %p2281_p11 }
 0x740   : > { %p2284_p0 = pnand %p2283_p13, %p2277_p8 }
 0x742   : > { %2287 = shalt.err (!%p2284_p0)
}
 0x743   : > { %2069 = dma.vmem_to_hbm [thread:$0]  (%p2453_p5), %s2949_s1, 256, %s2947_s26, %s1903_s30  }
 0x744 PF: > { %p2075_p1 = scmp.ge.s32.totalorder %s2322_s21, 2  ;;  %s1929_s16 = sand.u32 1, %s2310_s18  }
 0x745   : > { %s1930_s22 = scalar_lea.sflag [#allocation5], %s1929_s16 }
 0x746   : > { %p2072_p2 = pnand %p2075_p1, %p2457_p6 }
 0x748   : > { %2305 = dma.done.wait (!%p2072_p2), %s1930_s22, 256  }
 0x749   : > { %2307 = vsyncadd (!%p2072_p2), %s1930_s22, 4294967040  ;;  %s3042_s2 = sld [smem:[#allocation7_spill]]  ;;  %s3043_s20 = sld [smem:[#allocation8_spill]] }
 0x74a   : > { %p25_p3 = scmp.ge.s32.totalorder %s2440_s24, 4   ;;  %s3044_s18 = smov %s2314_s19 }
 0x74b   : > { %s3046_s21 = smov %s2440_s24 }
 0x74c   :  { %27 = sbr.rel (!%p25_p3) target bundleno = 8 (0x8), region = 115 }
 0x74f   : > { %s3045_s19 = smov %s3042_s2 }
 0x753   :  { %1935 = vsyncpa [#allocation5], 1 }
 0x754   :  { %1937 = vsyncpa [#allocation5 + $0x1], 1 }

</bundles_post_ra>
